<compile_context>
chip_gen: v7x
topology: tpu7x:2x2x1
jax: 0.10.0
libtpu: 0.0.40
codegen_flags: <defaults>
</compile_context>

<pallas_src>
import functools

import numpy as np
import jax
import jax.numpy as jnp
from jax.experimental import pallas as pl
from jax.experimental.pallas import tpu as pltpu

EPS = 1e-5
LANE = 128


# ----------------------------------------- helpers --------------------------------------------
def make_divisible(v, divisor=8, min_value=None):
    if min_value is None:
        min_value = divisor
    new_v = max(min_value, int(v + divisor / 2) // divisor * divisor)
    if new_v < 0.9 * v:
        new_v += divisor
    return new_v


def _round_up(x, m):
    return (x + m - 1) // m * m


def _apply_act(y, act):
    if act == "relu":
        return jnp.maximum(y, 0.0)
    if act == "hardswish":
        return y * jnp.clip(y + 3.0, 0.0, 6.0) * (1.0 / 6.0)
    return y  # "none"


def _bn_fold(gamma, beta, mean, var):
    scale = gamma * jax.lax.rsqrt(var + EPS)
    return scale, beta - mean * scale


def _pad_to(a, shape):
    return jnp.pad(a, [(0, s - d) for d, s in zip(a.shape, shape)])


# -------------------------- trace-time weight prep (BN folded, lane-padded) -------------------
def _prep_pw(w, bn, cp):
    """(Cout, Cin, 1) conv + BN -> (CP, CP) matmul weight (scale folded) + (1, CP) shift."""
    scale, shift = _bn_fold(*bn)
    wm = jnp.transpose(w[:, :, 0]) * scale[None, :]            # (Cin, Cout)
    return [_pad_to(wm, (cp, cp)), _pad_to(shift[None, :], (1, cp))]


def _prep_dw(w, bn, cp):
    """(C, 1, K) depthwise conv + BN -> (K, CP) per-tap weights (scale folded) + (1, CP) shift."""
    scale, shift = _bn_fold(*bn)
    k = w.shape[2]
    wm = jnp.transpose(w[:, 0, :]) * scale[None, :]            # (K, C)
    return [_pad_to(wm, (k, cp)), _pad_to(shift[None, :], (1, cp))]


def _prep_dense(w, bn, cp):
    """(Cout, Cin, K) dense conv + BN -> (K, CP, CP) per-tap matmul weights + (1, CP) shift."""
    scale, shift = _bn_fold(*bn)
    k = w.shape[2]
    wt = jnp.transpose(w, (2, 1, 0)) * scale[None, None, :]    # (K, Cin, Cout)
    return [_pad_to(wt, (k, cp, cp)), _pad_to(shift[None, :], (1, cp))]


def _const_index_map(ndim):
    return lambda b: (0,) * ndim


# ------------------------------------- fused Pallas kernel ------------------------------------
def _fused_kernel(*refs, plan, n_w, cp, off, padm, l0):
    """Whole-network forward for one batch element; activations stay in VMEM scratch."""
    x_ref = refs[0]
    w_refs = refs[1:1 + n_w]
    o_ref = refs[1 + n_w]
    buf_a, buf_b, buf_c = refs[2 + n_w:5 + n_w]

    halo_zeros = jnp.zeros((padm, cp), jnp.float32) if padm else None

    def write_act(dst, val, l_out):
        # Store activation at rows [off, off+l_out) and zero the trailing conv halo so the next
        # conv's padding reads zeros even when the sequence length shrinks.
        dst[pl.ds(off, l_out), :] = val
        if padm:
            dst[pl.ds(off + l_out, padm), :] = halo_zeros

    def tap_slice(src, start, n, stride):
        if stride == 1:
            return src[pl.ds(start, n), :]
        return src[pl.ds(start, n, stride), :]

    def pw_conv(src, dst, w_ref, b_ref, l, act, res_src=None):
        xv = src[pl.ds(off, l), :]
        y = jnp.dot(xv, w_ref[...], preferred_element_type=jnp.float32) + b_ref[...]
        y = _apply_act(y, act)
        if res_src is not None:
            y = y + res_src[pl.ds(off, l), :]
        write_act(dst, y, l)

    def dw_conv(src, dst, w_ref, b_ref, l_in, k, stride, act):
        pad = (k - 1) // 2
        l_out = (l_in + 2 * pad - k) // stride + 1
        acc = b_ref[...]                                        # (1, CP) shift, broadcasts
        for t in range(k):
            acc = acc + tap_slice(src, off - pad + t, l_out, stride) * w_ref[pl.ds(t, 1), :]
        write_act(dst, _apply_act(acc, act), l_out)
        return l_out

    def dense_conv(src, dst, w_ref, b_ref, l_in, k, stride, act):
        pad = (k - 1) // 2
        l_out = (l_in + 2 * pad - k) // stride + 1
        acc = b_ref[...]
        for t in range(k):
            acc = acc + jnp.dot(tap_slice(src, off - pad + t, l_out, stride), w_ref[t],
                                preferred_element_type=jnp.float32)
        write_act(dst, _apply_act(acc, act), l_out)
        return l_out

    # Zero scratch so all conv padding halos read as zeros (tiny: a few KiB of VMEM stores).
    buf_a[...] = jnp.zeros_like(buf_a)
    buf_b[...] = jnp.zeros_like(buf_b)
    buf_c[...] = jnp.zeros_like(buf_c)

    # Stage this batch element's (lane-padded) input into the current buffer.
    write_act(buf_a, x_ref[0], l0)

    wi = 0
    l = l0
    for op in plan:
        if op["kind"] == "stem":
            w_ref, b_ref = w_refs[wi], w_refs[wi + 1]
            wi += 2
            l = dense_conv(buf_a, buf_b, w_ref, b_ref, l, op["k"], op["stride"], "hardswish")
            buf_a, buf_b, buf_c = buf_b, buf_c, buf_a
        elif op["kind"] == "bneck":
            w1, b1, wd, bd, w2, b2 = w_refs[wi:wi + 6]
            wi += 6
            pw_conv(buf_a, buf_b, w1, b1, l, "relu")                         # expand (1x1)
            l2 = dw_conv(buf_b, buf_c, wd, bd, l, op["k"], op["stride"], "relu")  # depthwise
            pw_conv(buf_c, buf_b, w2, b2, l2, "none",                        # project (+res)
                    res_src=buf_a if op["res"] else None)
            l = l2
            buf_a, buf_b, buf_c = buf_b, buf_c, buf_a
        else:  # head: pwconv_bn + Hardswish -> AdaptiveAvgPool1d(1) -> Hardswish
            w_ref, b_ref = w_refs[wi], w_refs[wi + 1]
            wi += 2
            pw_conv(buf_a, buf_b, w_ref, b_ref, l, "hardswish")
            m = jnp.mean(buf_b[pl.ds(off, l), :], axis=0, keepdims=True)     # (1, CP)
            o_ref[0] = _apply_act(m, "hardswish")


# --------------------------------------- forward wrapper --------------------------------------
def tasne_forward_pallas(x_ncl, params, layers):
    """Forward pass of TASNeModel (classifier=False): features(x) -> (B, out_channels, 1)."""
    B, in_c, L0 = x_ncl.shape
    stem_w = params["stem"]["w"]
    stem_out, _, stem_k = stem_w.shape
    head_w = params["head"]["w"]
    out_channels = head_w.shape[0]

    # ---- static plan + channel / padding bookkeeping (pure Python, trace time) ----
    max_c = max(in_c, stem_out, out_channels)
    pad_max = (stem_k - 1) // 2
    plan = [dict(kind="stem", k=stem_k, stride=2)]
    for i, layer in enumerate(layers):
        p = params[f"bneck{i}"]
        exp_i, cin_i = p["pw1_w"].shape[0], p["pw1_w"].shape[1]
        cout_i = p["pw2_w"].shape[0]
        k = p["dw_w"].shape[2]
        stride = layer["stride"]
        max_c = max(max_c, cin_i, cout_i, exp_i)
        pad_max = max(pad_max, (k - 1) // 2)
        plan.append(dict(kind="bneck", k=k, stride=stride,
                         res=(stride == 1 and cin_i == cout_i)))
    plan.append(dict(kind="head"))

    CP = _round_up(max_c, LANE)                 # lane-dense channel width (MXU / full-lane vst)
    PADM = pad_max
    OFF = _round_up(max(PADM, 1), 8)            # 8-aligned activation start row in scratch
    LBUF = _round_up(OFF + L0 + PADM, 8)

    # ---- fold BN into weights, zero-pad channels to CP (trace-time constant folding) ----
    w_list = []
    w_list += _prep_dense(stem_w, params["stem"]["bn"], CP)
    for i in range(len(layers)):
        p = params[f"bneck{i}"]
        w_list += _prep_pw(p["pw1_w"], p["pw1_bn"], CP)
        w_list += _prep_dw(p["dw_w"], p["dw_bn"], CP)
        w_list += _prep_pw(p["pw2_w"], p["pw2_bn"], CP)
    w_list += _prep_pw(head_w, params["head"]["bn"], CP)

    # ---- NCL -> channels-last, lane-padded ----
    x = jnp.transpose(x_ncl, (0, 2, 1)).astype(jnp.float32)
    x = jnp.pad(x, ((0, 0), (0, 0), (0, CP - in_c)))            # (B, L0, CP)

    in_specs = [pl.BlockSpec((1, L0, CP), lambda b: (b, 0, 0))]
    in_specs += [pl.BlockSpec(w.shape, _const_index_map(w.ndim)) for w in w_list]

    kernel = functools.partial(_fused_kernel, plan=tuple(plan), n_w=len(w_list),
                               cp=CP, off=OFF, padm=PADM, l0=L0)

    out = pl.pallas_call(
        kernel,
        out_shape=jax.ShapeDtypeStruct((B, 1, CP), jnp.float32),
        grid_spec=pltpu.PrefetchScalarGridSpec(
            num_scalar_prefetch=0,
            grid=(B,),
            in_specs=in_specs,
            out_specs=pl.BlockSpec((1, 1, CP), lambda b: (b, 0, 0)),
            scratch_shapes=[pltpu.VMEM((LBUF, CP), jnp.float32)] * 3,
        ),
        compiler_params=pltpu.CompilerParams(
            dimension_semantics=("parallel",)),   # shard batch across v7x's 2 TensorCores
    )(x, *w_list)

    return out[:, 0, :out_channels][:, :, None]   # (B, out_channels, 1) — PyTorch NCL shape

    # TODO(synk): SelfAdaptiveIntuitionMemoryHead (SIMH classifier) source not provided;
    # model is built with classifier=False so features output is returned, as in the module.


# ----------------------------------- parameter construction -----------------------------------
def init_params(key, in_channels, out_channels, layers):
    keys = iter(jax.random.split(key, 256))

    def conv_w(cout, cin, k):
        fan_out = cout * k  # kaiming_normal_(mode='fan_out')
        std = (2.0 / fan_out) ** 0.5
        return std * jax.random.normal(next(keys), (cout, cin, k), jnp.float32)

    def bn(c):
        g = 1.0 + 0.1 * jax.random.normal(next(keys), (c,), jnp.float32)
        b = 0.1 * jax.random.normal(next(keys), (c,), jnp.float32)
        m = 0.1 * jax.random.normal(next(keys), (c,), jnp.float32)
        v = jax.random.uniform(next(keys), (c,), jnp.float32, minval=0.5, maxval=1.5)
        return (g, b, m, v)

    params = {}
    stem_out = make_divisible(in_channels)
    params["stem"] = dict(w=conv_w(stem_out, in_channels, 3), bn=bn(stem_out))
    for i, layer in enumerate(layers):
        cin = make_divisible(layer["in_channels"])
        cout = make_divisible(layer["out_channels"])
        exp = make_divisible(layer["expansion"])
        k = layer["kernel_size"]
        params[f"bneck{i}"] = dict(
            pw1_w=conv_w(exp, cin, 1), pw1_bn=bn(exp),
            dw_w=conv_w(exp, 1, k), dw_bn=bn(exp),
            pw2_w=conv_w(cout, exp, 1), pw2_bn=bn(cout),
        )
    head_in = make_divisible(layers[-1]["out_channels"])
    params["head"] = dict(w=conv_w(out_channels, head_in, 1), bn=bn(out_channels))
    return params


# ---------------------------- pure-JAX reference (for verification) ----------------------------
def _ref_conv1d(x, w, stride, pad, groups=1):
    return jax.lax.conv_general_dilated(
        x, w, window_strides=(stride,), padding=[(pad, pad)],
        dimension_numbers=("NCH", "OIH", "NCH"), feature_group_count=groups)


def _ref_bn(x, g, b, m, v):
    return (x - m[None, :, None]) * jax.lax.rsqrt(v[None, :, None] + EPS) * g[None, :, None] \
        + b[None, :, None]


def _ref_hswish(x):
    return x * jnp.clip(x + 3.0, 0.0, 6.0) / 6.0


def tasne_forward_ref(x, params, layers):
    p = params["stem"]
    x = _ref_hswish(_ref_bn(_ref_conv1d(x, p["w"], 2, 1), *p["bn"]))
    for i, layer in enumerate(layers):
        p = params[f"bneck{i}"]
        cin = make_divisible(layer["in_channels"])
        cout = make_divisible(layer["out_channels"])
        exp = make_divisible(layer["expansion"])
        k = layer["kernel_size"]
        stride = layer["stride"]
        pad = (k - 1) // 2
        residual = (stride == 1) and (cin == cout)
        h = jnp.maximum(_ref_bn(_ref_conv1d(x, p["pw1_w"], 1, 0), *p["pw1_bn"]), 0.0)
        h = jnp.maximum(_ref_bn(_ref_conv1d(h, p["dw_w"], stride, pad, groups=exp),
                                *p["dw_bn"]), 0.0)
        h = _ref_bn(_ref_conv1d(h, p["pw2_w"], 1, 0), *p["pw2_bn"])
        x = x + h if residual else h
    p = params["head"]
    x = _ref_hswish(_ref_bn(_ref_conv1d(x, p["w"], 1, 0), *p["bn"]))
    x = jnp.mean(x, axis=-1, keepdims=True)
    return _ref_hswish(x)


# ---------------------------------------------- main ------------------------------------------
if __name__ == "__main__":
    key = jax.random.PRNGKey(0)
    kx, kp = jax.random.split(key)

    in_channels = 4        # raw sensor channels
    out_channels = 32      # backbone feature channels
    B, L = 2, 64           # batch, sequence length (Conv1d -> NCL input)

    # profile of bottlenecks (make_divisible keeps 8/16/32 unchanged; md(4)=8 for the stem)
    layers = [
        dict(in_channels=8,  out_channels=16, kernel_size=3, stride=1, expansion=16),
        dict(in_channels=16, out_channels=16, kernel_size=3, stride=2, expansion=32),
        dict(in_channels=16, out_channels=16, kernel_size=5, stride=1, expansion=32),  # residual
    ]

    x = jax.random.normal(kx, (B, in_channels, L), jnp.float32)
    params = init_params(kp, in_channels, out_channels, layers)

    out = jax.block_until_ready(tasne_forward_pallas(x, params, layers))
    ref = jax.block_until_ready(tasne_forward_ref(x, params, layers))

    assert out.shape == (B, out_channels, 1), out.shape
    np.testing.assert_allclose(np.asarray(out), np.asarray(ref), rtol=2e-4, atol=2e-4)
    print("KERNEL_OK")
</pallas_src>

<mosaic_0001>
module attributes {stable_mosaic.version = 11 : i64} {
  func.func @_fused_kernel(%arg0: i32, %arg1: memref<1x64x128xf32, #tpu.memory_space<vmem>>, %arg2: memref<3x128x128xf32, #tpu.memory_space<vmem>>, %arg3: memref<1x128xf32, #tpu.memory_space<vmem>>, %arg4: memref<128x128xf32, #tpu.memory_space<vmem>>, %arg5: memref<1x128xf32, #tpu.memory_space<vmem>>, %arg6: memref<3x128xf32, #tpu.memory_space<vmem>>, %arg7: memref<1x128xf32, #tpu.memory_space<vmem>>, %arg8: memref<128x128xf32, #tpu.memory_space<vmem>>, %arg9: memref<1x128xf32, #tpu.memory_space<vmem>>, %arg10: memref<128x128xf32, #tpu.memory_space<vmem>>, %arg11: memref<1x128xf32, #tpu.memory_space<vmem>>, %arg12: memref<3x128xf32, #tpu.memory_space<vmem>>, %arg13: memref<1x128xf32, #tpu.memory_space<vmem>>, %arg14: memref<128x128xf32, #tpu.memory_space<vmem>>, %arg15: memref<1x128xf32, #tpu.memory_space<vmem>>, %arg16: memref<128x128xf32, #tpu.memory_space<vmem>>, %arg17: memref<1x128xf32, #tpu.memory_space<vmem>>, %arg18: memref<5x128xf32, #tpu.memory_space<vmem>>, %arg19: memref<1x128xf32, #tpu.memory_space<vmem>>, %arg20: memref<128x128xf32, #tpu.memory_space<vmem>>, %arg21: memref<1x128xf32, #tpu.memory_space<vmem>>, %arg22: memref<128x128xf32, #tpu.memory_space<vmem>>, %arg23: memref<1x128xf32, #tpu.memory_space<vmem>>, %arg24: memref<1x1x128xf32, #tpu.memory_space<vmem>>, %arg25: memref<80x128xf32, #tpu.memory_space<vmem>>, %arg26: memref<80x128xf32, #tpu.memory_space<vmem>>, %arg27: memref<80x128xf32, #tpu.memory_space<vmem>>) attributes {dimension_semantics = [#tpu.dimension_semantics<parallel>], iteration_bounds = array<i64: 2>, scalar_prefetch = 0 : i64, scratch_operands = 3 : i64, tpu.core_type = #tpu.core_type<tc>, window_params = [{transform_indices = @transform_0, window_bounds = array<i64: 1, 64, 128>}, {pipeline_mode = #tpu.pipeline_mode<synchronous>, transform_indices = @transform_1, window_bounds = array<i64: 3, 128, 128>}, {pipeline_mode = #tpu.pipeline_mode<synchronous>, transform_indices = @transform_2, window_bounds = array<i64: 1, 128>}, {pipeline_mode = #tpu.pipeline_mode<synchronous>, transform_indices = @transform_3, window_bounds = array<i64: 128, 128>}, {pipeline_mode = #tpu.pipeline_mode<synchronous>, transform_indices = @transform_4, window_bounds = array<i64: 1, 128>}, {pipeline_mode = #tpu.pipeline_mode<synchronous>, transform_indices = @transform_5, window_bounds = array<i64: 3, 128>}, {pipeline_mode = #tpu.pipeline_mode<synchronous>, transform_indices = @transform_6, window_bounds = array<i64: 1, 128>}, {pipeline_mode = #tpu.pipeline_mode<synchronous>, transform_indices = @transform_7, window_bounds = array<i64: 128, 128>}, {pipeline_mode = #tpu.pipeline_mode<synchronous>, transform_indices = @transform_8, window_bounds = array<i64: 1, 128>}, {pipeline_mode = #tpu.pipeline_mode<synchronous>, transform_indices = @transform_9, window_bounds = array<i64: 128, 128>}, {pipeline_mode = #tpu.pipeline_mode<synchronous>, transform_indices = @transform_10, window_bounds = array<i64: 1, 128>}, {pipeline_mode = #tpu.pipeline_mode<synchronous>, transform_indices = @transform_11, window_bounds = array<i64: 3, 128>}, {pipeline_mode = #tpu.pipeline_mode<synchronous>, transform_indices = @transform_12, window_bounds = array<i64: 1, 128>}, {pipeline_mode = #tpu.pipeline_mode<synchronous>, transform_indices = @transform_13, window_bounds = array<i64: 128, 128>}, {pipeline_mode = #tpu.pipeline_mode<synchronous>, transform_indices = @transform_14, window_bounds = array<i64: 1, 128>}, {pipeline_mode = #tpu.pipeline_mode<synchronous>, transform_indices = @transform_15, window_bounds = array<i64: 128, 128>}, {pipeline_mode = #tpu.pipeline_mode<synchronous>, transform_indices = @transform_16, window_bounds = array<i64: 1, 128>}, {pipeline_mode = #tpu.pipeline_mode<synchronous>, transform_indices = @transform_17, window_bounds = array<i64: 5, 128>}, {pipeline_mode = #tpu.pipeline_mode<synchronous>, transform_indices = @transform_18, window_bounds = array<i64: 1, 128>}, {pipeline_mode = #tpu.pipeline_mode<synchronous>, transform_indices = @transform_19, window_bounds = array<i64: 128, 128>}, {pipeline_mode = #tpu.pipeline_mode<synchronous>, transform_indices = @transform_20, window_bounds = array<i64: 1, 128>}, {pipeline_mode = #tpu.pipeline_mode<synchronous>, transform_indices = @transform_21, window_bounds = array<i64: 128, 128>}, {pipeline_mode = #tpu.pipeline_mode<synchronous>, transform_indices = @transform_22, window_bounds = array<i64: 1, 128>}, {transform_indices = @transform_23, window_bounds = array<i64: 1, 1, 128>}]} {
    %cst = arith.constant 0.000000e+00 : f32
    %0 = vector.broadcast %cst : f32 to vector<2x128xf32>
    %cst_0 = arith.constant 0.000000e+00 : f32
    %1 = vector.broadcast %cst_0 : f32 to vector<80x128xf32>
    %c0 = arith.constant 0 : index
    %c0_1 = arith.constant 0 : index
    %2 = vector.load %arg25[%c0, %c0_1] : memref<80x128xf32, #tpu.memory_space<vmem>>, vector<80x128xf32>
    tpu.vector_store %arg25[%c0, %c0_1], %1 {strides = array<i32>} : memref<80x128xf32, #tpu.memory_space<vmem>>, vector<80x128xf32>,
    %cst_2 = arith.constant 0.000000e+00 : f32
    %3 = vector.broadcast %cst_2 : f32 to vector<80x128xf32>
    %c0_3 = arith.constant 0 : index
    %c0_4 = arith.constant 0 : index
    %4 = vector.load %arg26[%c0_3, %c0_4] : memref<80x128xf32, #tpu.memory_space<vmem>>, vector<80x128xf32>
    tpu.vector_store %arg26[%c0_3, %c0_4], %3 {strides = array<i32>} : memref<80x128xf32, #tpu.memory_space<vmem>>, vector<80x128xf32>,
    %cst_5 = arith.constant 0.000000e+00 : f32
    %5 = vector.broadcast %cst_5 : f32 to vector<80x128xf32>
    %c0_6 = arith.constant 0 : index
    %c0_7 = arith.constant 0 : index
    %6 = vector.load %arg27[%c0_6, %c0_7] : memref<80x128xf32, #tpu.memory_space<vmem>>, vector<80x128xf32>
    tpu.vector_store %arg27[%c0_6, %c0_7], %5 {strides = array<i32>} : memref<80x128xf32, #tpu.memory_space<vmem>>, vector<80x128xf32>,
    %c0_8 = arith.constant 0 : index
    %c0_9 = arith.constant 0 : index
    %c0_10 = arith.constant 0 : index
    %7 = vector.load %arg1[%c0_8, %c0_9, %c0_10] : memref<1x64x128xf32, #tpu.memory_space<vmem>>, vector<1x64x128xf32>
    %8 = vector.shape_cast %7 : vector<1x64x128xf32> to vector<64x128xf32>
    %c8 = arith.constant 8 : index
    %c0_11 = arith.constant 0 : index
    %9 = vector.load %arg25[%c8, %c0_11] : memref<80x128xf32, #tpu.memory_space<vmem>>, vector<64x128xf32>
    tpu.vector_store %arg25[%c8, %c0_11], %8 {strides = array<i32>} : memref<80x128xf32, #tpu.memory_space<vmem>>, vector<64x128xf32>,
    %c72 = arith.constant 72 : index
    %c0_12 = arith.constant 0 : index
    %10 = vector.load %arg25[%c72, %c0_12] : memref<80x128xf32, #tpu.memory_space<vmem>>, vector<2x128xf32>
    tpu.vector_store %arg25[%c72, %c0_12], %0 {strides = array<i32>} : memref<80x128xf32, #tpu.memory_space<vmem>>, vector<2x128xf32>,
    %c0_13 = arith.constant 0 : index
    %c0_14 = arith.constant 0 : index
    %11 = vector.load %arg3[%c0_13, %c0_14] : memref<1x128xf32, #tpu.memory_space<vmem>>, vector<1x128xf32>
    %c7 = arith.constant 7 : index
    %c0_15 = arith.constant 0 : index
    %12 = tpu.strided_load %arg25[%c7, %c0_15] {strides = array<i32: 2, 1>} : memref<80x128xf32, #tpu.memory_space<vmem>>, vector<32x128xf32>
    %c0_16 = arith.constant 0 : index
    %c0_17 = arith.constant 0 : index
    %c0_18 = arith.constant 0 : index
    %13 = vector.load %arg2[%c0_16, %c0_17, %c0_18] : memref<3x128x128xf32, #tpu.memory_space<vmem>>, vector<1x128x128xf32>
    %14 = vector.shape_cast %13 : vector<1x128x128xf32> to vector<128x128xf32>
    %cst_19 = arith.constant dense<0.000000e+00> : vector<32x128xf32>
    %15 = tpu.matmul %12, %14, %cst_19 {dimension_numbers = #tpu.dot_dimension_numbers<[1], [0], [0], [1], [0, 0, 1, 1], [], []>} : vector<32x128xf32>, vector<128x128xf32>, vector<32x128xf32> -> vector<32x128xf32>
    %16 = vector.broadcast %11 : vector<1x128xf32> to vector<32x128xf32>
    %17 = arith.addf %16, %15 : vector<32x128xf32>
    %c8_20 = arith.constant 8 : index
    %c0_21 = arith.constant 0 : index
    %18 = tpu.strided_load %arg25[%c8_20, %c0_21] {strides = array<i32: 2, 1>} : memref<80x128xf32, #tpu.memory_space<vmem>>, vector<32x128xf32>
    %c1 = arith.constant 1 : index
    %c0_22 = arith.constant 0 : index
    %c0_23 = arith.constant 0 : index
    %19 = vector.load %arg2[%c1, %c0_22, %c0_23] : memref<3x128x128xf32, #tpu.memory_space<vmem>>, vector<1x128x128xf32>
    %20 = vector.shape_cast %19 : vector<1x128x128xf32> to vector<128x128xf32>
    %cst_24 = arith.constant dense<0.000000e+00> : vector<32x128xf32>
    %21 = tpu.matmul %18, %20, %cst_24 {dimension_numbers = #tpu.dot_dimension_numbers<[1], [0], [0], [1], [0, 0, 1, 1], [], []>} : vector<32x128xf32>, vector<128x128xf32>, vector<32x128xf32> -> vector<32x128xf32>
    %22 = arith.addf %17, %21 : vector<32x128xf32>
    %c9 = arith.constant 9 : index
    %c0_25 = arith.constant 0 : index
    %23 = tpu.strided_load %arg25[%c9, %c0_25] {strides = array<i32: 2, 1>} : memref<80x128xf32, #tpu.memory_space<vmem>>, vector<32x128xf32>
    %c2 = arith.constant 2 : index
    %c0_26 = arith.constant 0 : index
    %c0_27 = arith.constant 0 : index
    %24 = vector.load %arg2[%c2, %c0_26, %c0_27] : memref<3x128x128xf32, #tpu.memory_space<vmem>>, vector<1x128x128xf32>
    %25 = vector.shape_cast %24 : vector<1x128x128xf32> to vector<128x128xf32>
    %cst_28 = arith.constant dense<0.000000e+00> : vector<32x128xf32>
    %26 = tpu.matmul %23, %25, %cst_28 {dimension_numbers = #tpu.dot_dimension_numbers<[1], [0], [0], [1], [0, 0, 1, 1], [], []>} : vector<32x128xf32>, vector<128x128xf32>, vector<32x128xf32> -> vector<32x128xf32>
    %27 = arith.addf %22, %26 : vector<32x128xf32>
    %cst_29 = arith.constant 3.000000e+00 : f32
    %28 = vector.broadcast %cst_29 : f32 to vector<32x128xf32>
    %29 = arith.addf %27, %28 : vector<32x128xf32>
    %cst_30 = arith.constant 0.000000e+00 : f32
    %cst_31 = arith.constant 6.000000e+00 : f32
    %30 = vector.broadcast %cst_30 : f32 to vector<32x128xf32>
    %31 = arith.maximumf %30, %29 : vector<32x128xf32>
    %32 = vector.broadcast %cst_31 : f32 to vector<32x128xf32>
    %33 = arith.minimumf %32, %31 : vector<32x128xf32>
    %34 = arith.mulf %27, %33 : vector<32x128xf32>
    %cst_32 = arith.constant 0.166666672 : f32
    %35 = vector.broadcast %cst_32 : f32 to vector<32x128xf32>
    %36 = arith.mulf %34, %35 : vector<32x128xf32>
    %c8_33 = arith.constant 8 : index
    %c0_34 = arith.constant 0 : index
    %37 = vector.load %arg26[%c8_33, %c0_34] : memref<80x128xf32, #tpu.memory_space<vmem>>, vector<32x128xf32>
    tpu.vector_store %arg26[%c8_33, %c0_34], %36 {strides = array<i32>} : memref<80x128xf32, #tpu.memory_space<vmem>>, vector<32x128xf32>,
    %c40 = arith.constant 40 : index
    %c0_35 = arith.constant 0 : index
    %38 = vector.load %arg26[%c40, %c0_35] : memref<80x128xf32, #tpu.memory_space<vmem>>, vector<2x128xf32>
    tpu.vector_store %arg26[%c40, %c0_35], %0 {strides = array<i32>} : memref<80x128xf32, #tpu.memory_space<vmem>>, vector<2x128xf32>,
    %c8_36 = arith.constant 8 : index
    %c0_37 = arith.constant 0 : index
    %39 = vector.load %arg26[%c8_36, %c0_37] : memref<80x128xf32, #tpu.memory_space<vmem>>, vector<32x128xf32>
    %c0_38 = arith.constant 0 : index
    %c0_39 = arith.constant 0 : index
    %40 = vector.load %arg4[%c0_38, %c0_39] : memref<128x128xf32, #tpu.memory_space<vmem>>, vector<128x128xf32>
    %cst_40 = arith.constant dense<0.000000e+00> : vector<32x128xf32>
    %41 = tpu.matmul %39, %40, %cst_40 {dimension_numbers = #tpu.dot_dimension_numbers<[1], [0], [0], [1], [0, 0, 1, 1], [], []>} : vector<32x128xf32>, vector<128x128xf32>, vector<32x128xf32> -> vector<32x128xf32>
    %c0_41 = arith.constant 0 : index
    %c0_42 = arith.constant 0 : index
    %42 = vector.load %arg5[%c0_41, %c0_42] : memref<1x128xf32, #tpu.memory_space<vmem>>, vector<1x128xf32>
    %43 = vector.broadcast %42 : vector<1x128xf32> to vector<32x128xf32>
    %44 = arith.addf %41, %43 : vector<32x128xf32>
    %cst_43 = arith.constant 0.000000e+00 : f32
    %45 = vector.broadcast %cst_43 : f32 to vector<32x128xf32>
    %46 = arith.maximumf %44, %45 : vector<32x128xf32>
    %c8_44 = arith.constant 8 : index
    %c0_45 = arith.constant 0 : index
    %47 = vector.load %arg27[%c8_44, %c0_45] : memref<80x128xf32, #tpu.memory_space<vmem>>, vector<32x128xf32>
    tpu.vector_store %arg27[%c8_44, %c0_45], %46 {strides = array<i32>} : memref<80x128xf32, #tpu.memory_space<vmem>>, vector<32x128xf32>,
    %c40_46 = arith.constant 40 : index
    %c0_47 = arith.constant 0 : index
    %48 = vector.load %arg27[%c40_46, %c0_47] : memref<80x128xf32, #tpu.memory_space<vmem>>, vector<2x128xf32>
    tpu.vector_store %arg27[%c40_46, %c0_47], %0 {strides = array<i32>} : memref<80x128xf32, #tpu.memory_space<vmem>>, vector<2x128xf32>,
    %c0_48 = arith.constant 0 : index
    %c0_49 = arith.constant 0 : index
    %49 = vector.load %arg7[%c0_48, %c0_49] : memref<1x128xf32, #tpu.memory_space<vmem>>, vector<1x128xf32>
    %c7_50 = arith.constant 7 : index
    %c0_51 = arith.constant 0 : index
    %50 = vector.load %arg27[%c7_50, %c0_51] : memref<80x128xf32, #tpu.memory_space<vmem>>, vector<32x128xf32>
    %c0_52 = arith.constant 0 : index
    %c0_53 = arith.constant 0 : index
    %51 = vector.load %arg6[%c0_52, %c0_53] : memref<3x128xf32, #tpu.memory_space<vmem>>, vector<1x128xf32>
    %52 = vector.broadcast %51 : vector<1x128xf32> to vector<32x128xf32>
    %53 = arith.mulf %50, %52 : vector<32x128xf32>
    %54 = vector.broadcast %49 : vector<1x128xf32> to vector<32x128xf32>
    %55 = arith.addf %54, %53 : vector<32x128xf32>
    %c8_54 = arith.constant 8 : index
    %c0_55 = arith.constant 0 : index
    %56 = vector.load %arg27[%c8_54, %c0_55] : memref<80x128xf32, #tpu.memory_space<vmem>>, vector<32x128xf32>
    %c1_56 = arith.constant 1 : index
    %c0_57 = arith.constant 0 : index
    %57 = vector.load %arg6[%c1_56, %c0_57] : memref<3x128xf32, #tpu.memory_space<vmem>>, vector<1x128xf32>
    %58 = vector.broadcast %57 : vector<1x128xf32> to vector<32x128xf32>
    %59 = arith.mulf %56, %58 : vector<32x128xf32>
    %60 = arith.addf %55, %59 : vector<32x128xf32>
    %c9_58 = arith.constant 9 : index
    %c0_59 = arith.constant 0 : index
    %61 = vector.load %arg27[%c9_58, %c0_59] : memref<80x128xf32, #tpu.memory_space<vmem>>, vector<32x128xf32>
    %c2_60 = arith.constant 2 : index
    %c0_61 = arith.constant 0 : index
    %62 = vector.load %arg6[%c2_60, %c0_61] : memref<3x128xf32, #tpu.memory_space<vmem>>, vector<1x128xf32>
    %63 = vector.broadcast %62 : vector<1x128xf32> to vector<32x128xf32>
    %64 = arith.mulf %61, %63 : vector<32x128xf32>
    %65 = arith.addf %60, %64 : vector<32x128xf32>
    %cst_62 = arith.constant 0.000000e+00 : f32
    %66 = vector.broadcast %cst_62 : f32 to vector<32x128xf32>
    %67 = arith.maximumf %65, %66 : vector<32x128xf32>
    %c8_63 = arith.constant 8 : index
    %c0_64 = arith.constant 0 : index
    %68 = vector.load %arg25[%c8_63, %c0_64] : memref<80x128xf32, #tpu.memory_space<vmem>>, vector<32x128xf32>
    tpu.vector_store %arg25[%c8_63, %c0_64], %67 {strides = array<i32>} : memref<80x128xf32, #tpu.memory_space<vmem>>, vector<32x128xf32>,
    %c40_65 = arith.constant 40 : index
    %c0_66 = arith.constant 0 : index
    %69 = vector.load %arg25[%c40_65, %c0_66] : memref<80x128xf32, #tpu.memory_space<vmem>>, vector<2x128xf32>
    tpu.vector_store %arg25[%c40_65, %c0_66], %0 {strides = array<i32>} : memref<80x128xf32, #tpu.memory_space<vmem>>, vector<2x128xf32>,
    %c8_67 = arith.constant 8 : index
    %c0_68 = arith.constant 0 : index
    %70 = vector.load %arg25[%c8_67, %c0_68] : memref<80x128xf32, #tpu.memory_space<vmem>>, vector<32x128xf32>
    %c0_69 = arith.constant 0 : index
    %c0_70 = arith.constant 0 : index
    %71 = vector.load %arg8[%c0_69, %c0_70] : memref<128x128xf32, #tpu.memory_space<vmem>>, vector<128x128xf32>
    %cst_71 = arith.constant dense<0.000000e+00> : vector<32x128xf32>
    %72 = tpu.matmul %70, %71, %cst_71 {dimension_numbers = #tpu.dot_dimension_numbers<[1], [0], [0], [1], [0, 0, 1, 1], [], []>} : vector<32x128xf32>, vector<128x128xf32>, vector<32x128xf32> -> vector<32x128xf32>
    %c0_72 = arith.constant 0 : index
    %c0_73 = arith.constant 0 : index
    %73 = vector.load %arg9[%c0_72, %c0_73] : memref<1x128xf32, #tpu.memory_space<vmem>>, vector<1x128xf32>
    %74 = vector.broadcast %73 : vector<1x128xf32> to vector<32x128xf32>
    %75 = arith.addf %72, %74 : vector<32x128xf32>
    %c8_74 = arith.constant 8 : index
    %c0_75 = arith.constant 0 : index
    %76 = vector.load %arg27[%c8_74, %c0_75] : memref<80x128xf32, #tpu.memory_space<vmem>>, vector<32x128xf32>
    tpu.vector_store %arg27[%c8_74, %c0_75], %75 {strides = array<i32>} : memref<80x128xf32, #tpu.memory_space<vmem>>, vector<32x128xf32>,
    %c40_76 = arith.constant 40 : index
    %c0_77 = arith.constant 0 : index
    %77 = vector.load %arg27[%c40_76, %c0_77] : memref<80x128xf32, #tpu.memory_space<vmem>>, vector<2x128xf32>
    tpu.vector_store %arg27[%c40_76, %c0_77], %0 {strides = array<i32>} : memref<80x128xf32, #tpu.memory_space<vmem>>, vector<2x128xf32>,
    %c8_78 = arith.constant 8 : index
    %c0_79 = arith.constant 0 : index
    %78 = vector.load %arg27[%c8_78, %c0_79] : memref<80x128xf32, #tpu.memory_space<vmem>>, vector<32x128xf32>
    %c0_80 = arith.constant 0 : index
    %c0_81 = arith.constant 0 : index
    %79 = vector.load %arg10[%c0_80, %c0_81] : memref<128x128xf32, #tpu.memory_space<vmem>>, vector<128x128xf32>
    %cst_82 = arith.constant dense<0.000000e+00> : vector<32x128xf32>
    %80 = tpu.matmul %78, %79, %cst_82 {dimension_numbers = #tpu.dot_dimension_numbers<[1], [0], [0], [1], [0, 0, 1, 1], [], []>} : vector<32x128xf32>, vector<128x128xf32>, vector<32x128xf32> -> vector<32x128xf32>
    %c0_83 = arith.constant 0 : index
    %c0_84 = arith.constant 0 : index
    %81 = vector.load %arg11[%c0_83, %c0_84] : memref<1x128xf32, #tpu.memory_space<vmem>>, vector<1x128xf32>
    %82 = vector.broadcast %81 : vector<1x128xf32> to vector<32x128xf32>
    %83 = arith.addf %80, %82 : vector<32x128xf32>
    %cst_85 = arith.constant 0.000000e+00 : f32
    %84 = vector.broadcast %cst_85 : f32 to vector<32x128xf32>
    %85 = arith.maximumf %83, %84 : vector<32x128xf32>
    %c8_86 = arith.constant 8 : index
    %c0_87 = arith.constant 0 : index
    %86 = vector.load %arg25[%c8_86, %c0_87] : memref<80x128xf32, #tpu.memory_space<vmem>>, vector<32x128xf32>
    tpu.vector_store %arg25[%c8_86, %c0_87], %85 {strides = array<i32>} : memref<80x128xf32, #tpu.memory_space<vmem>>, vector<32x128xf32>,
    %c40_88 = arith.constant 40 : index
    %c0_89 = arith.constant 0 : index
    %87 = vector.load %arg25[%c40_88, %c0_89] : memref<80x128xf32, #tpu.memory_space<vmem>>, vector<2x128xf32>
    tpu.vector_store %arg25[%c40_88, %c0_89], %0 {strides = array<i32>} : memref<80x128xf32, #tpu.memory_space<vmem>>, vector<2x128xf32>,
    %c0_90 = arith.constant 0 : index
    %c0_91 = arith.constant 0 : index
    %88 = vector.load %arg13[%c0_90, %c0_91] : memref<1x128xf32, #tpu.memory_space<vmem>>, vector<1x128xf32>
    %c7_92 = arith.constant 7 : index
    %c0_93 = arith.constant 0 : index
    %89 = tpu.strided_load %arg25[%c7_92, %c0_93] {strides = array<i32: 2, 1>} : memref<80x128xf32, #tpu.memory_space<vmem>>, vector<16x128xf32>
    %c0_94 = arith.constant 0 : index
    %c0_95 = arith.constant 0 : index
    %90 = vector.load %arg12[%c0_94, %c0_95] : memref<3x128xf32, #tpu.memory_space<vmem>>, vector<1x128xf32>
    %91 = vector.broadcast %90 : vector<1x128xf32> to vector<16x128xf32>
    %92 = arith.mulf %89, %91 : vector<16x128xf32>
    %93 = vector.broadcast %88 : vector<1x128xf32> to vector<16x128xf32>
    %94 = arith.addf %93, %92 : vector<16x128xf32>
    %c8_96 = arith.constant 8 : index
    %c0_97 = arith.constant 0 : index
    %95 = tpu.strided_load %arg25[%c8_96, %c0_97] {strides = array<i32: 2, 1>} : memref<80x128xf32, #tpu.memory_space<vmem>>, vector<16x128xf32>
    %c1_98 = arith.constant 1 : index
    %c0_99 = arith.constant 0 : index
    %96 = vector.load %arg12[%c1_98, %c0_99] : memref<3x128xf32, #tpu.memory_space<vmem>>, vector<1x128xf32>
    %97 = vector.broadcast %96 : vector<1x128xf32> to vector<16x128xf32>
    %98 = arith.mulf %95, %97 : vector<16x128xf32>
    %99 = arith.addf %94, %98 : vector<16x128xf32>
    %c9_100 = arith.constant 9 : index
    %c0_101 = arith.constant 0 : index
    %100 = tpu.strided_load %arg25[%c9_100, %c0_101] {strides = array<i32: 2, 1>} : memref<80x128xf32, #tpu.memory_space<vmem>>, vector<16x128xf32>
    %c2_102 = arith.constant 2 : index
    %c0_103 = arith.constant 0 : index
    %101 = vector.load %arg12[%c2_102, %c0_103] : memref<3x128xf32, #tpu.memory_space<vmem>>, vector<1x128xf32>
    %102 = vector.broadcast %101 : vector<1x128xf32> to vector<16x128xf32>
    %103 = arith.mulf %100, %102 : vector<16x128xf32>
    %104 = arith.addf %99, %103 : vector<16x128xf32>
    %cst_104 = arith.constant 0.000000e+00 : f32
    %105 = vector.broadcast %cst_104 : f32 to vector<16x128xf32>
    %106 = arith.maximumf %104, %105 : vector<16x128xf32>
    %c8_105 = arith.constant 8 : index
    %c0_106 = arith.constant 0 : index
    %107 = vector.load %arg26[%c8_105, %c0_106] : memref<80x128xf32, #tpu.memory_space<vmem>>, vector<16x128xf32>
    tpu.vector_store %arg26[%c8_105, %c0_106], %106 {strides = array<i32>} : memref<80x128xf32, #tpu.memory_space<vmem>>, vector<16x128xf32>,
    %c24 = arith.constant 24 : index
    %c0_107 = arith.constant 0 : index
    %108 = vector.load %arg26[%c24, %c0_107] : memref<80x128xf32, #tpu.memory_space<vmem>>, vector<2x128xf32>
    tpu.vector_store %arg26[%c24, %c0_107], %0 {strides = array<i32>} : memref<80x128xf32, #tpu.memory_space<vmem>>, vector<2x128xf32>,
    %c8_108 = arith.constant 8 : index
    %c0_109 = arith.constant 0 : index
    %109 = vector.load %arg26[%c8_108, %c0_109] : memref<80x128xf32, #tpu.memory_space<vmem>>, vector<16x128xf32>
    %c0_110 = arith.constant 0 : index
    %c0_111 = arith.constant 0 : index
    %110 = vector.load %arg14[%c0_110, %c0_111] : memref<128x128xf32, #tpu.memory_space<vmem>>, vector<128x128xf32>
    %cst_112 = arith.constant dense<0.000000e+00> : vector<16x128xf32>
    %111 = tpu.matmul %109, %110, %cst_112 {dimension_numbers = #tpu.dot_dimension_numbers<[1], [0], [0], [1], [0, 0, 1, 1], [], []>} : vector<16x128xf32>, vector<128x128xf32>, vector<16x128xf32> -> vector<16x128xf32>
    %c0_113 = arith.constant 0 : index
    %c0_114 = arith.constant 0 : index
    %112 = vector.load %arg15[%c0_113, %c0_114] : memref<1x128xf32, #tpu.memory_space<vmem>>, vector<1x128xf32>
    %113 = vector.broadcast %112 : vector<1x128xf32> to vector<16x128xf32>
    %114 = arith.addf %111, %113 : vector<16x128xf32>
    %c8_115 = arith.constant 8 : index
    %c0_116 = arith.constant 0 : index
    %115 = vector.load %arg25[%c8_115, %c0_116] : memref<80x128xf32, #tpu.memory_space<vmem>>, vector<16x128xf32>
    tpu.vector_store %arg25[%c8_115, %c0_116], %114 {strides = array<i32>} : memref<80x128xf32, #tpu.memory_space<vmem>>, vector<16x128xf32>,
    %c24_117 = arith.constant 24 : index
    %c0_118 = arith.constant 0 : index
    %116 = vector.load %arg25[%c24_117, %c0_118] : memref<80x128xf32, #tpu.memory_space<vmem>>, vector<2x128xf32>
    tpu.vector_store %arg25[%c24_117, %c0_118], %0 {strides = array<i32>} : memref<80x128xf32, #tpu.memory_space<vmem>>, vector<2x128xf32>,
    %c8_119 = arith.constant 8 : index
    %c0_120 = arith.constant 0 : index
    %117 = vector.load %arg25[%c8_119, %c0_120] : memref<80x128xf32, #tpu.memory_space<vmem>>, vector<16x128xf32>
    %c0_121 = arith.constant 0 : index
    %c0_122 = arith.constant 0 : index
    %118 = vector.load %arg16[%c0_121, %c0_122] : memref<128x128xf32, #tpu.memory_space<vmem>>, vector<128x128xf32>
    %cst_123 = arith.constant dense<0.000000e+00> : vector<16x128xf32>
    %119 = tpu.matmul %117, %118, %cst_123 {dimension_numbers = #tpu.dot_dimension_numbers<[1], [0], [0], [1], [0, 0, 1, 1], [], []>} : vector<16x128xf32>, vector<128x128xf32>, vector<16x128xf32> -> vector<16x128xf32>
    %c0_124 = arith.constant 0 : index
    %c0_125 = arith.constant 0 : index
    %120 = vector.load %arg17[%c0_124, %c0_125] : memref<1x128xf32, #tpu.memory_space<vmem>>, vector<1x128xf32>
    %121 = vector.broadcast %120 : vector<1x128xf32> to vector<16x128xf32>
    %122 = arith.addf %119, %121 : vector<16x128xf32>
    %cst_126 = arith.constant 0.000000e+00 : f32
    %123 = vector.broadcast %cst_126 : f32 to vector<16x128xf32>
    %124 = arith.maximumf %122, %123 : vector<16x128xf32>
    %c8_127 = arith.constant 8 : index
    %c0_128 = arith.constant 0 : index
    %125 = vector.load %arg26[%c8_127, %c0_128] : memref<80x128xf32, #tpu.memory_space<vmem>>, vector<16x128xf32>
    tpu.vector_store %arg26[%c8_127, %c0_128], %124 {strides = array<i32>} : memref<80x128xf32, #tpu.memory_space<vmem>>, vector<16x128xf32>,
    %c24_129 = arith.constant 24 : index
    %c0_130 = arith.constant 0 : index
    %126 = vector.load %arg26[%c24_129, %c0_130] : memref<80x128xf32, #tpu.memory_space<vmem>>, vector<2x128xf32>
    tpu.vector_store %arg26[%c24_129, %c0_130], %0 {strides = array<i32>} : memref<80x128xf32, #tpu.memory_space<vmem>>, vector<2x128xf32>,
    %c0_131 = arith.constant 0 : index
    %c0_132 = arith.constant 0 : index
    %127 = vector.load %arg19[%c0_131, %c0_132] : memref<1x128xf32, #tpu.memory_space<vmem>>, vector<1x128xf32>
    %c6 = arith.constant 6 : index
    %c0_133 = arith.constant 0 : index
    %128 = vector.load %arg26[%c6, %c0_133] : memref<80x128xf32, #tpu.memory_space<vmem>>, vector<16x128xf32>
    %c0_134 = arith.constant 0 : index
    %c0_135 = arith.constant 0 : index
    %129 = vector.load %arg18[%c0_134, %c0_135] : memref<5x128xf32, #tpu.memory_space<vmem>>, vector<1x128xf32>
    %130 = vector.broadcast %129 : vector<1x128xf32> to vector<16x128xf32>
    %131 = arith.mulf %128, %130 : vector<16x128xf32>
    %132 = vector.broadcast %127 : vector<1x128xf32> to vector<16x128xf32>
    %133 = arith.addf %132, %131 : vector<16x128xf32>
    %c7_136 = arith.constant 7 : index
    %c0_137 = arith.constant 0 : index
    %134 = vector.load %arg26[%c7_136, %c0_137] : memref<80x128xf32, #tpu.memory_space<vmem>>, vector<16x128xf32>
    %c1_138 = arith.constant 1 : index
    %c0_139 = arith.constant 0 : index
    %135 = vector.load %arg18[%c1_138, %c0_139] : memref<5x128xf32, #tpu.memory_space<vmem>>, vector<1x128xf32>
    %136 = vector.broadcast %135 : vector<1x128xf32> to vector<16x128xf32>
    %137 = arith.mulf %134, %136 : vector<16x128xf32>
    %138 = arith.addf %133, %137 : vector<16x128xf32>
    %c8_140 = arith.constant 8 : index
    %c0_141 = arith.constant 0 : index
    %139 = vector.load %arg26[%c8_140, %c0_141] : memref<80x128xf32, #tpu.memory_space<vmem>>, vector<16x128xf32>
    %c2_142 = arith.constant 2 : index
    %c0_143 = arith.constant 0 : index
    %140 = vector.load %arg18[%c2_142, %c0_143] : memref<5x128xf32, #tpu.memory_space<vmem>>, vector<1x128xf32>
    %141 = vector.broadcast %140 : vector<1x128xf32> to vector<16x128xf32>
    %142 = arith.mulf %139, %141 : vector<16x128xf32>
    %143 = arith.addf %138, %142 : vector<16x128xf32>
    %c9_144 = arith.constant 9 : index
    %c0_145 = arith.constant 0 : index
    %144 = vector.load %arg26[%c9_144, %c0_145] : memref<80x128xf32, #tpu.memory_space<vmem>>, vector<16x128xf32>
    %c3 = arith.constant 3 : index
    %c0_146 = arith.constant 0 : index
    %145 = vector.load %arg18[%c3, %c0_146] : memref<5x128xf32, #tpu.memory_space<vmem>>, vector<1x128xf32>
    %146 = vector.broadcast %145 : vector<1x128xf32> to vector<16x128xf32>
    %147 = arith.mulf %144, %146 : vector<16x128xf32>
    %148 = arith.addf %143, %147 : vector<16x128xf32>
    %c10 = arith.constant 10 : index
    %c0_147 = arith.constant 0 : index
    %149 = vector.load %arg26[%c10, %c0_147] : memref<80x128xf32, #tpu.memory_space<vmem>>, vector<16x128xf32>
    %c4 = arith.constant 4 : index
    %c0_148 = arith.constant 0 : index
    %150 = vector.load %arg18[%c4, %c0_148] : memref<5x128xf32, #tpu.memory_space<vmem>>, vector<1x128xf32>
    %151 = vector.broadcast %150 : vector<1x128xf32> to vector<16x128xf32>
    %152 = arith.mulf %149, %151 : vector<16x128xf32>
    %153 = arith.addf %148, %152 : vector<16x128xf32>
    %cst_149 = arith.constant 0.000000e+00 : f32
    %154 = vector.broadcast %cst_149 : f32 to vector<16x128xf32>
    %155 = arith.maximumf %153, %154 : vector<16x128xf32>
    %c8_150 = arith.constant 8 : index
    %c0_151 = arith.constant 0 : index
    %156 = vector.load %arg27[%c8_150, %c0_151] : memref<80x128xf32, #tpu.memory_space<vmem>>, vector<16x128xf32>
    tpu.vector_store %arg27[%c8_150, %c0_151], %155 {strides = array<i32>} : memref<80x128xf32, #tpu.memory_space<vmem>>, vector<16x128xf32>,
    %c24_152 = arith.constant 24 : index
    %c0_153 = arith.constant 0 : index
    %157 = vector.load %arg27[%c24_152, %c0_153] : memref<80x128xf32, #tpu.memory_space<vmem>>, vector<2x128xf32>
    tpu.vector_store %arg27[%c24_152, %c0_153], %0 {strides = array<i32>} : memref<80x128xf32, #tpu.memory_space<vmem>>, vector<2x128xf32>,
    %c8_154 = arith.constant 8 : index
    %c0_155 = arith.constant 0 : index
    %158 = vector.load %arg27[%c8_154, %c0_155] : memref<80x128xf32, #tpu.memory_space<vmem>>, vector<16x128xf32>
    %c0_156 = arith.constant 0 : index
    %c0_157 = arith.constant 0 : index
    %159 = vector.load %arg20[%c0_156, %c0_157] : memref<128x128xf32, #tpu.memory_space<vmem>>, vector<128x128xf32>
    %cst_158 = arith.constant dense<0.000000e+00> : vector<16x128xf32>
    %160 = tpu.matmul %158, %159, %cst_158 {dimension_numbers = #tpu.dot_dimension_numbers<[1], [0], [0], [1], [0, 0, 1, 1], [], []>} : vector<16x128xf32>, vector<128x128xf32>, vector<16x128xf32> -> vector<16x128xf32>
    %c0_159 = arith.constant 0 : index
    %c0_160 = arith.constant 0 : index
    %161 = vector.load %arg21[%c0_159, %c0_160] : memref<1x128xf32, #tpu.memory_space<vmem>>, vector<1x128xf32>
    %162 = vector.broadcast %161 : vector<1x128xf32> to vector<16x128xf32>
    %163 = arith.addf %160, %162 : vector<16x128xf32>
    %c8_161 = arith.constant 8 : index
    %c0_162 = arith.constant 0 : index
    %164 = vector.load %arg25[%c8_161, %c0_162] : memref<80x128xf32, #tpu.memory_space<vmem>>, vector<16x128xf32>
    %165 = arith.addf %163, %164 : vector<16x128xf32>
    %c8_163 = arith.constant 8 : index
    %c0_164 = arith.constant 0 : index
    %166 = vector.load %arg26[%c8_163, %c0_164] : memref<80x128xf32, #tpu.memory_space<vmem>>, vector<16x128xf32>
    tpu.vector_store %arg26[%c8_163, %c0_164], %165 {strides = array<i32>} : memref<80x128xf32, #tpu.memory_space<vmem>>, vector<16x128xf32>,
    %c24_165 = arith.constant 24 : index
    %c0_166 = arith.constant 0 : index
    %167 = vector.load %arg26[%c24_165, %c0_166] : memref<80x128xf32, #tpu.memory_space<vmem>>, vector<2x128xf32>
    tpu.vector_store %arg26[%c24_165, %c0_166], %0 {strides = array<i32>} : memref<80x128xf32, #tpu.memory_space<vmem>>, vector<2x128xf32>,
    %c8_167 = arith.constant 8 : index
    %c0_168 = arith.constant 0 : index
    %168 = vector.load %arg26[%c8_167, %c0_168] : memref<80x128xf32, #tpu.memory_space<vmem>>, vector<16x128xf32>
    %c0_169 = arith.constant 0 : index
    %c0_170 = arith.constant 0 : index
    %169 = vector.load %arg22[%c0_169, %c0_170] : memref<128x128xf32, #tpu.memory_space<vmem>>, vector<128x128xf32>
    %cst_171 = arith.constant dense<0.000000e+00> : vector<16x128xf32>
    %170 = tpu.matmul %168, %169, %cst_171 {dimension_numbers = #tpu.dot_dimension_numbers<[1], [0], [0], [1], [0, 0, 1, 1], [], []>} : vector<16x128xf32>, vector<128x128xf32>, vector<16x128xf32> -> vector<16x128xf32>
    %c0_172 = arith.constant 0 : index
    %c0_173 = arith.constant 0 : index
    %171 = vector.load %arg23[%c0_172, %c0_173] : memref<1x128xf32, #tpu.memory_space<vmem>>, vector<1x128xf32>
    %172 = vector.broadcast %171 : vector<1x128xf32> to vector<16x128xf32>
    %173 = arith.addf %170, %172 : vector<16x128xf32>
    %cst_174 = arith.constant 3.000000e+00 : f32
    %174 = vector.broadcast %cst_174 : f32 to vector<16x128xf32>
    %175 = arith.addf %173, %174 : vector<16x128xf32>
    %cst_175 = arith.constant 0.000000e+00 : f32
    %cst_176 = arith.constant 6.000000e+00 : f32
    %176 = vector.broadcast %cst_175 : f32 to vector<16x128xf32>
    %177 = arith.maximumf %176, %175 : vector<16x128xf32>
    %178 = vector.broadcast %cst_176 : f32 to vector<16x128xf32>
    %179 = arith.minimumf %178, %177 : vector<16x128xf32>
    %180 = arith.mulf %173, %179 : vector<16x128xf32>
    %cst_177 = arith.constant 0.166666672 : f32
    %181 = vector.broadcast %cst_177 : f32 to vector<16x128xf32>
    %182 = arith.mulf %180, %181 : vector<16x128xf32>
    %c8_178 = arith.constant 8 : index
    %c0_179 = arith.constant 0 : index
    %183 = vector.load %arg27[%c8_178, %c0_179] : memref<80x128xf32, #tpu.memory_space<vmem>>, vector<16x128xf32>
    tpu.vector_store %arg27[%c8_178, %c0_179], %182 {strides = array<i32>} : memref<80x128xf32, #tpu.memory_space<vmem>>, vector<16x128xf32>,
    %c24_180 = arith.constant 24 : index
    %c0_181 = arith.constant 0 : index
    %184 = vector.load %arg27[%c24_180, %c0_181] : memref<80x128xf32, #tpu.memory_space<vmem>>, vector<2x128xf32>
    tpu.vector_store %arg27[%c24_180, %c0_181], %0 {strides = array<i32>} : memref<80x128xf32, #tpu.memory_space<vmem>>, vector<2x128xf32>,
    %c8_182 = arith.constant 8 : index
    %c0_183 = arith.constant 0 : index
    %185 = vector.load %arg27[%c8_182, %c0_183] : memref<80x128xf32, #tpu.memory_space<vmem>>, vector<16x128xf32>
    %cst_184 = arith.constant dense<0.000000e+00> : vector<128xf32>
    %186 = vector.multi_reduction <add>, %185, %cst_184 [0] : vector<16x128xf32> to vector<128xf32>
    %187 = vector.shape_cast %186 : vector<128xf32> to vector<1x128xf32>
    %cst_185 = arith.constant 1.600000e+01 : f32
    %188 = vector.broadcast %cst_185 : f32 to vector<1x128xf32>
    %189 = arith.divf %187, %188 : vector<1x128xf32>
    %cst_186 = arith.constant 3.000000e+00 : f32
    %190 = vector.broadcast %cst_186 : f32 to vector<1x128xf32>
    %191 = arith.addf %189, %190 : vector<1x128xf32>
    %cst_187 = arith.constant 0.000000e+00 : f32
    %cst_188 = arith.constant 6.000000e+00 : f32
    %192 = vector.broadcast %cst_187 : f32 to vector<1x128xf32>
    %193 = arith.maximumf %192, %191 : vector<1x128xf32>
    %194 = vector.broadcast %cst_188 : f32 to vector<1x128xf32>
    %195 = arith.minimumf %194, %193 : vector<1x128xf32>
    %196 = arith.mulf %189, %195 : vector<1x128xf32>
    %cst_189 = arith.constant 0.166666672 : f32
    %197 = vector.broadcast %cst_189 : f32 to vector<1x128xf32>
    %198 = arith.mulf %196, %197 : vector<1x128xf32>
    %c0_190 = arith.constant 0 : index
    %c0_191 = arith.constant 0 : index
    %c0_192 = arith.constant 0 : index
    %199 = vector.load %arg24[%c0_190, %c0_191, %c0_192] : memref<1x1x128xf32, #tpu.memory_space<vmem>>, vector<1x1x128xf32>
    %200 = vector.shape_cast %199 : vector<1x1x128xf32> to vector<1x128xf32>
    %201 = vector.shape_cast %198 : vector<1x128xf32> to vector<1x1x128xf32>
    tpu.vector_store %arg24[%c0_190, %c0_191, %c0_192], %201 {strides = array<i32>} : memref<1x1x128xf32, #tpu.memory_space<vmem>>, vector<1x1x128xf32>,
    return
  }
  func.func @transform_0(%arg0: i32) -> (i32, i32, i32) {
    %c0_i32 = arith.constant 0 : i32
    %c0_i32_0 = arith.constant 0 : i32
    %c0_i32_1 = arith.constant 0 : i32
    return %arg0, %c0_i32, %c0_i32_0 : i32, i32, i32
  }
  func.func @transform_1(%arg0: i32) -> (i32, i32, i32) {
    %c0_i32 = arith.constant 0 : i32
    %c0_i32_0 = arith.constant 0 : i32
    %c0_i32_1 = arith.constant 0 : i32
    %c0_i32_2 = arith.constant 0 : i32
    return %c0_i32, %c0_i32_0, %c0_i32_1 : i32, i32, i32
  }
  func.func @transform_2(%arg0: i32) -> (i32, i32) {
    %c0_i32 = arith.constant 0 : i32
    %c0_i32_0 = arith.constant 0 : i32
    %c0_i32_1 = arith.constant 0 : i32
    return %c0_i32, %c0_i32_0 : i32, i32
  }
  func.func @transform_3(%arg0: i32) -> (i32, i32) {
    %c0_i32 = arith.constant 0 : i32
    %c0_i32_0 = arith.constant 0 : i32
    %c0_i32_1 = arith.constant 0 : i32
    return %c0_i32, %c0_i32_0 : i32, i32
  }
  func.func @transform_4(%arg0: i32) -> (i32, i32) {
    %c0_i32 = arith.constant 0 : i32
    %c0_i32_0 = arith.constant 0 : i32
    %c0_i32_1 = arith.constant 0 : i32
    return %c0_i32, %c0_i32_0 : i32, i32
  }
  func.func @transform_5(%arg0: i32) -> (i32, i32) {
    %c0_i32 = arith.constant 0 : i32
    %c0_i32_0 = arith.constant 0 : i32
    %c0_i32_1 = arith.constant 0 : i32
    return %c0_i32, %c0_i32_0 : i32, i32
  }
  func.func @transform_6(%arg0: i32) -> (i32, i32) {
    %c0_i32 = arith.constant 0 : i32
    %c0_i32_0 = arith.constant 0 : i32
    %c0_i32_1 = arith.constant 0 : i32
    return %c0_i32, %c0_i32_0 : i32, i32
  }
  func.func @transform_7(%arg0: i32) -> (i32, i32) {
    %c0_i32 = arith.constant 0 : i32
    %c0_i32_0 = arith.constant 0 : i32
    %c0_i32_1 = arith.constant 0 : i32
    return %c0_i32, %c0_i32_0 : i32, i32
  }
  func.func @transform_8(%arg0: i32) -> (i32, i32) {
    %c0_i32 = arith.constant 0 : i32
    %c0_i32_0 = arith.constant 0 : i32
    %c0_i32_1 = arith.constant 0 : i32
    return %c0_i32, %c0_i32_0 : i32, i32
  }
  func.func @transform_9(%arg0: i32) -> (i32, i32) {
    %c0_i32 = arith.constant 0 : i32
    %c0_i32_0 = arith.constant 0 : i32
    %c0_i32_1 = arith.constant 0 : i32
    return %c0_i32, %c0_i32_0 : i32, i32
  }
  func.func @transform_10(%arg0: i32) -> (i32, i32) {
    %c0_i32 = arith.constant 0 : i32
    %c0_i32_0 = arith.constant 0 : i32
    %c0_i32_1 = arith.constant 0 : i32
    return %c0_i32, %c0_i32_0 : i32, i32
  }
  func.func @transform_11(%arg0: i32) -> (i32, i32) {
    %c0_i32 = arith.constant 0 : i32
    %c0_i32_0 = arith.constant 0 : i32
    %c0_i32_1 = arith.constant 0 : i32
    return %c0_i32, %c0_i32_0 : i32, i32
  }
  func.func @transform_12(%arg0: i32) -> (i32, i32) {
    %c0_i32 = arith.constant 0 : i32
    %c0_i32_0 = arith.constant 0 : i32
    %c0_i32_1 = arith.constant 0 : i32
    return %c0_i32, %c0_i32_0 : i32, i32
  }
  func.func @transform_13(%arg0: i32) -> (i32, i32) {
    %c0_i32 = arith.constant 0 : i32
    %c0_i32_0 = arith.constant 0 : i32
    %c0_i32_1 = arith.constant 0 : i32
    return %c0_i32, %c0_i32_0 : i32, i32
  }
  func.func @transform_14(%arg0: i32) -> (i32, i32) {
    %c0_i32 = arith.constant 0 : i32
    %c0_i32_0 = arith.constant 0 : i32
    %c0_i32_1 = arith.constant 0 : i32
    return %c0_i32, %c0_i32_0 : i32, i32
  }
  func.func @transform_15(%arg0: i32) -> (i32, i32) {
    %c0_i32 = arith.constant 0 : i32
    %c0_i32_0 = arith.constant 0 : i32
    %c0_i32_1 = arith.constant 0 : i32
    return %c0_i32, %c0_i32_0 : i32, i32
  }
  func.func @transform_16(%arg0: i32) -> (i32, i32) {
    %c0_i32 = arith.constant 0 : i32
    %c0_i32_0 = arith.constant 0 : i32
    %c0_i32_1 = arith.constant 0 : i32
    return %c0_i32, %c0_i32_0 : i32, i32
  }
  func.func @transform_17(%arg0: i32) -> (i32, i32) {
    %c0_i32 = arith.constant 0 : i32
    %c0_i32_0 = arith.constant 0 : i32
    %c0_i32_1 = arith.constant 0 : i32
    return %c0_i32, %c0_i32_0 : i32, i32
  }
  func.func @transform_18(%arg0: i32) -> (i32, i32) {
    %c0_i32 = arith.constant 0 : i32
    %c0_i32_0 = arith.constant 0 : i32
    %c0_i32_1 = arith.constant 0 : i32
    return %c0_i32, %c0_i32_0 : i32, i32
  }
  func.func @transform_19(%arg0: i32) -> (i32, i32) {
    %c0_i32 = arith.constant 0 : i32
    %c0_i32_0 = arith.constant 0 : i32
    %c0_i32_1 = arith.constant 0 : i32
    return %c0_i32, %c0_i32_0 : i32, i32
  }
  func.func @transform_20(%arg0: i32) -> (i32, i32) {
    %c0_i32 = arith.constant 0 : i32
    %c0_i32_0 = arith.constant 0 : i32
    %c0_i32_1 = arith.constant 0 : i32
    return %c0_i32, %c0_i32_0 : i32, i32
  }
  func.func @transform_21(%arg0: i32) -> (i32, i32) {
    %c0_i32 = arith.constant 0 : i32
    %c0_i32_0 = arith.constant 0 : i32
    %c0_i32_1 = arith.constant 0 : i32
    return %c0_i32, %c0_i32_0 : i32, i32
  }
  func.func @transform_22(%arg0: i32) -> (i32, i32) {
    %c0_i32 = arith.constant 0 : i32
    %c0_i32_0 = arith.constant 0 : i32
    %c0_i32_1 = arith.constant 0 : i32
    return %c0_i32, %c0_i32_0 : i32, i32
  }
  func.func @transform_23(%arg0: i32) -> (i32, i32, i32) {
    %c0_i32 = arith.constant 0 : i32
    %c0_i32_0 = arith.constant 0 : i32
    %c0_i32_1 = arith.constant 0 : i32
    return %arg0, %c0_i32, %c0_i32_0 : i32, i32, i32
  }
}

</mosaic_0001>

<bundles_post_ra>
// kernel: tpu_custom_call.1
= control target key start
LH: loop header
LB: loop body
LE: loop exit
PB: predicated region body
PF: predicated region fallthrough
CT: control target
= control target key end

     0   :  { %s4447_s0 = inlined_call_operand.hbm [shape: f32[2,64,128], index: 0, kind: input, shape index: {}]   ;;  %s4448_s1 = inlined_call_operand.hbm [shape: f32[3,128,128], index: 1, kind: input, shape index: {}]   ;;  %s4449_s2 = inlined_call_operand.vmem [shape: f32[1,128], index: 2, kind: input, shape index: {}]   ;;  %s4450_s3 = inlined_call_operand.hbm [shape: f32[128,128], index: 3, kind: input, shape index: {}]   ;;  %s4451_s4 = inlined_call_operand.vmem [shape: f32[1,128], index: 4, kind: input, shape index: {}]   ;;  %s4452_s5 = inlined_call_operand.vmem [shape: f32[3,128], index: 5, kind: input, shape index: {}]   ;;  %s4453_s6 = inlined_call_operand.vmem [shape: f32[1,128], index: 6, kind: input, shape index: {}]   ;;  %s4454_s7 = inlined_call_operand.hbm [shape: f32[128,128], index: 7, kind: input, shape index: {}]   ;;  %s4455_s8 = inlined_call_operand.vmem [shape: f32[1,128], index: 8, kind: input, shape index: {}]   ;;  %s4456_s9 = inlined_call_operand.hbm [shape: f32[128,128], index: 9, kind: input, shape index: {}]   ;;  %s4457_s10 = inlined_call_operand.vmem [shape: f32[1,128], index: 10, kind: input, shape index: {}]   ;;  %s4458_s11 = inlined_call_operand.vmem [shape: f32[3,128], index: 11, kind: input, shape index: {}]   ;;  %s4459_s12 = inlined_call_operand.vmem [shape: f32[1,128], index: 12, kind: input, shape index: {}]   ;;  %s4460_s13 = inlined_call_operand.hbm [shape: f32[128,128], index: 13, kind: input, shape index: {}]   ;;  %s4461_s14 = inlined_call_operand.vmem [shape: f32[1,128], index: 14, kind: input, shape index: {}]   ;;  %s4462_s15 = inlined_call_operand.hbm [shape: f32[128,128], index: 15, kind: input, shape index: {}]   ;;  %s4463_s16 = inlined_call_operand.vmem [shape: f32[1,128], index: 16, kind: input, shape index: {}]   ;;  %s4464_s17 = inlined_call_operand.vmem [shape: f32[5,128], index: 17, kind: input, shape index: {}]   ;;  %s4465_s18 = inlined_call_operand.vmem [shape: f32[1,128], index: 18, kind: input, shape index: {}]   ;;  %s4466_s19 = inlined_call_operand.hbm [shape: f32[128,128], index: 19, kind: input, shape index: {}]   ;;  %s4467_s20 = inlined_call_operand.vmem [shape: f32[1,128], index: 20, kind: input, shape index: {}]   ;;  %s4468_s21 = inlined_call_operand.hbm [shape: f32[128,128], index: 21, kind: input, shape index: {}]   ;;  %s4469_s22 = inlined_call_operand.vmem [shape: f32[1,128], index: 22, kind: input, shape index: {}]   ;;  %s4470_s23 = inlined_call_operand.hbm [shape: f32[2,1,128], index: 23, kind: output, shape index: {}]  }
   0x1   :  { %4486 = sst [smem:[#allocation27_spill]] %s4447_s0 }
   0x2   :  { %4487 = sst [smem:[#allocation28_spill]] %s4448_s1 }
   0x3   :  { %4488 = sst [smem:[#allocation29_spill]] %s4449_s2 }
   0x4   :  { %4489 = sst [smem:[#allocation30_spill]] %s4450_s3 }
   0x5   :  { %4490 = sst [smem:[#allocation31_spill]] %s4451_s4 }
   0x6   :  { %4491 = sst [smem:[#allocation32_spill]] %s4452_s5 }
   0x7   :  { %4492 = sst [smem:[#allocation33_spill]] %s4453_s6 }
   0x8   :  { %4493 = sst [smem:[#allocation34_spill]] %s4454_s7 }
   0x9   :  { %4494 = sst [smem:[#allocation35_spill]] %s4455_s8 }
   0xa   :  { %4495 = sst [smem:[#allocation36_spill]] %s4458_s11 }
   0xb   :  { %4496 = sst [smem:[#allocation37_spill]] %s4459_s12 }
   0xc   :  { %4497 = sst [smem:[#allocation38_spill]] %s4460_s13 }
   0xd   :  { %4498 = sst [smem:[#allocation39_spill]] %s4461_s14 }
   0xe   :  { %4499 = sst [smem:[#allocation40_spill]] %s4463_s16 }
   0xf   :  { %4500 = sst [smem:[#allocation41_spill]] %s4464_s17 }
  0x10   :  { %4501 = sst [smem:[#allocation42_spill]] %s4465_s18 }
  0x11   :  { %4502 = sst [smem:[#allocation43_spill]] %s4467_s20 }
  0x12   :  { %4503 = sst [smem:[#allocation44_spill]] %s4469_s22 }
  0x13   :  { %4504 = sst [smem:[#allocation45_spill]] %s4470_s23 }
  0x14   :  { %28 = vsyncpa [#allocation6], 0 }
  0x15   :  { %30 = vsyncpa [#allocation6 + $0x1], 0 }
  0x16   :  { %31 = vsyncpa [#allocation9], 0 }
  0x17   :  { %32 = vsyncpa [#allocation12], 0 }
  0x18   :  { %33 = vsyncpa [#allocation15], 0 }
  0x19   :  { %34 = vsyncpa [#allocation18], 0 }
  0x1a   :  { %35 = vsyncpa [#allocation7], 0 }
  0x1b   :  { %37 = vsyncpa [#allocation7 + $0x1], 0  ;;  %s3946_s4 = smov 0   ;;  %s3948_s30 = smov 0  }
  0x1c   :  { %s3950_s24 = smov 0   ;;  %s3952_s25 = smov 0  }
  0x1d LB: > { %s3813_s5 = smov [#allocation8]   ;;  %s3967_s26 = sadd.s32 4294967295, %s3811_s25   ;;  %s3811_s25 = sphi %s3952_s25, %s4550_s25   ;;  %s3807_s24 = sphi %s3950_s24, %s4549_s24   ;;  %s3803_s30 = sphi %s3948_s30, %s4548_s30   ;;  %s3799_s4 = sphi %s3946_s4, %s4547_s4  }
  0x1e   : > { %s574_s1 = sshll.u32 %s3813_s5, 4  ;;  %p2403_p0 = scmp.ge.s32.totalorder %s3811_s25, 1  ;;  %s3972_s1 = int_to_ptr.vmem [resolvable:$true] %s574_s1 }
  0x1f   : > { %p4480_p1 = scmp.eq.s32.totalorder %s3967_s26, 0  ;;  %p562_p2 = scmp.lt.s32.totalorder %s3811_s25, 3 }
  0x20   : > { %s3814_s6 = smov [#allocation11]   ;;  %s3815_s28 = smov [#allocation14]  }
  0x21   : > { %p3974_p3 = pnand %p2403_p0, %p562_p2  ;;  %s612_s27 = sshll.u32 %s3814_s6, 4  ;;  %s3987_s27 = int_to_ptr.vmem [resolvable:$true] %s612_s27 }
  0x22   : > { %s650_s29 = sshll.u32 %s3815_s28, 4  ;;  %s4507_s5 = sld [smem:[#allocation28_spill]]  ;;  %s3989_s29 = int_to_ptr.vmem [resolvable:$true] %s650_s29 }
  0x23   : > { %s4505_s2 = scalar_select %p3974_p3, 1, 0 }
  0x24   : > { %p3380_p5 = pneg %p3974_p3 }
  0x26   : > { %p3983_p6 = pnand %p3380_p5, %p4480_p1 }
  0x28   : > { %s3475_s23 = scalar_lea.hbm %s4507_s5, 6144  ;;  %p3999_p8 = pneg %p3983_p6 }
  0x29   : > { %p3476_p7 = scmp.ne.s32.totalorder %s4507_s5, %s3475_s23  ;;  %p3482_p11 = scmp.lt.u32.totalorder %s3475_s23, %s4507_s5 }
  0x2b   : > { %p3478_p9 = pnand %p3999_p8, %p3476_p7 }
  0x2d   : > { %p3479_p10 = pneg %p3478_p9 }
  0x2f   : > { %p3484_p12 = pnand %p3482_p11, %p3479_p10 }
  0x31   : > { %3487 = shalt.err (!%p3484_p12)
}
  0x32   : > { %s3488_s20 = scalar_lea.vmem %s3972_s1, 6144  ;;  %p3496_p5 = scmp.lt.s32.totalorder %s3972_s1, %s3972_s1 }
  0x33   : > { %p3489_p13 = scmp.ne.s32.totalorder %s3972_s1, %s3488_s20  ;;  %p3497_p4 = scmp.lt.s32.totalorder %s3488_s20, %s3488_s20 }
  0x35   : > { %p3491_p0 = pnand %p3489_p13, %p3999_p8  ;;  %p3498_p7 = por %p3497_p4, %p3496_p5 }
  0x37   : > { %p3492_p2 = pneg %p3491_p0 }
  0x39   : > { %p3499_p9 = pnand %p3498_p7, %p3492_p2 }
  0x3b   : > { %3502 = shalt.err (!%p3499_p9)
}
  0x3c   : > { %s4482_s22 = smov 128   ;;  %s4483_s17 = smov 8  }
  0x3d   : > { %3383 = dma.hbm_to_vmem [thread:$0]  (!%p3983_p6), %s4507_s5, 6144, %s3972_s1, [#allocation9], %s4482_s22, %s4482_s22, %s4483_s17  }
  0x3e   : > { %s4509_s18 = sld [smem:[#allocation34_spill]] }
  0x44   : > { %s3503_s20 = scalar_lea.hbm %s4509_s18, 2048 }
  0x45   : > { %p3504_p4 = scmp.ne.s32.totalorder %s4509_s18, %s3503_s20  ;;  %p3510_p12 = scmp.lt.u32.totalorder %s3503_s20, %s4509_s18 }
  0x47   : > { %p3506_p10 = pnand %p3504_p4, %p3999_p8 }
  0x49   : > { %p3507_p11 = pneg %p3506_p10 }
  0x4b   : > { %p3512_p13 = pnand %p3510_p12, %p3507_p11 }
  0x4d   : > { %3515 = shalt.err (!%p3512_p13)
}
  0x4e   : > { %s3516_s1 = scalar_lea.vmem %s3987_s27, 2048  ;;  %p3524_p7 = scmp.lt.s32.totalorder %s3987_s27, %s3987_s27 }
  0x4f   : > { %p3517_p0 = scmp.ne.s32.totalorder %s3987_s27, %s3516_s1  ;;  %p3525_p9 = scmp.lt.s32.totalorder %s3516_s1, %s3516_s1 }
  0x51   : > { %p3519_p2 = pnand %p3517_p0, %p3999_p8  ;;  %p3526_p4 = por %p3525_p9, %p3524_p7 }
  0x53   : > { %p3520_p5 = pneg %p3519_p2 }
  0x55   : > { %p3527_p10 = pnand %p3526_p4, %p3520_p5 }
  0x57   : > { %3530 = shalt.err (!%p3527_p10)
}
  0x58   : > { %3389 = dma.hbm_to_vmem [thread:$0]  (!%p3983_p6), %s4509_s18, 2048, %s3987_s27, [#allocation12], %s4482_s22, %s4482_s22, %s4483_s17  }
  0x59   : > { %s4510_s13 = sld [smem:[#allocation38_spill]] }
  0x5f   : > { %s3531_s23 = scalar_lea.hbm %s4510_s13, 2048 }
  0x60   : > { %p3532_p11 = scmp.ne.s32.totalorder %s4510_s13, %s3531_s23  ;;  %p3538_p0 = scmp.lt.u32.totalorder %s3531_s23, %s4510_s13 }
  0x62   : > { %p3534_p12 = pnand %p3532_p11, %p3999_p8 }
  0x64   : > { %p3535_p13 = pneg %p3534_p12 }
  0x66   : > { %p3540_p2 = pnand %p3538_p0, %p3535_p13 }
  0x68   : > { %3543 = shalt.err (!%p3540_p2)
}
  0x69   : > { %s3544_s27 = scalar_lea.vmem %s3989_s29, 2048  ;;  %p3552_p4 = scmp.lt.s32.totalorder %s3989_s29, %s3989_s29 }
  0x6a   : > { %p3545_p5 = scmp.ne.s32.totalorder %s3989_s29, %s3544_s27  ;;  %p3553_p10 = scmp.lt.s32.totalorder %s3544_s27, %s3544_s27 }
  0x6c   : > { %p3547_p7 = pnand %p3545_p5, %p3999_p8  ;;  %p3554_p11 = por %p3553_p10, %p3552_p4 }
  0x6e   : > { %p3548_p9 = pneg %p3547_p7 }
  0x70   : > { %p3555_p12 = pnand %p3554_p11, %p3548_p9 }
  0x72   : > { %3558 = shalt.err (!%p3555_p12)
}
  0x73   : > { %3395 = dma.hbm_to_vmem [thread:$0]  (!%p3983_p6), %s4510_s13, 2048, %s3989_s29, [#allocation15], %s4482_s22, %s4482_s22, %s4483_s17  }
  0x74   : > { %s3818_s12 = smov [#allocation17]   ;;  %s3819_s16 = smov [#allocation10]  }
  0x75   : > { %s688_s14 = sshll.u32 %s3818_s12, 4  ;;  %s590_s23 = sshll.u32 %s3819_s16, 4  ;;  %s689_s14 = int_to_ptr.vmem [resolvable:$true] %s688_s14  ;;  %s591_s23 = int_to_ptr.vmem [resolvable:$true] %s590_s23 }
  0x76   : > { %s3559_s28 = scalar_lea.hbm %s4466_s19, 2048 }
  0x77   : > { %p3560_p13 = scmp.ne.s32.totalorder %s4466_s19, %s3559_s28  ;;  %p3566_p5 = scmp.lt.u32.totalorder %s3559_s28, %s4466_s19 }
  0x79   : > { %p3562_p0 = pnand %p3560_p13, %p3999_p8 }
  0x7b   : > { %p3563_p2 = pneg %p3562_p0 }
  0x7d   : > { %p3568_p7 = pnand %p3566_p5, %p3563_p2 }
  0x7f   : > { %3571 = shalt.err (!%p3568_p7)
}
  0x80   : > { %s3572_s29 = scalar_lea.vmem %s689_s14, 2048  ;;  %p3580_p11 = scmp.lt.s32.totalorder %s689_s14, %s689_s14 }
  0x81   : > { %p3573_p9 = scmp.ne.s32.totalorder %s689_s14, %s3572_s29  ;;  %p3581_p12 = scmp.lt.s32.totalorder %s3572_s29, %s3572_s29 }
  0x83   : > { %p3575_p4 = pnand %p3573_p9, %p3999_p8  ;;  %p3582_p1 = por %p3581_p12, %p3580_p11 }
  0x85   : > { %p3576_p10 = pneg %p3575_p4 }
  0x87   : > { %p3583_p3 = pnand %p3582_p1, %p3576_p10 }
  0x89   : > { %3586 = shalt.err (!%p3583_p3)
}
  0x8a   : > { %3401 = dma.hbm_to_vmem [thread:$0]  (!%p3983_p6), %s4466_s19, 2048, %s689_s14, [#allocation18], %s4482_s22, %s4482_s22, %s4483_s17  }
  0x8b   : > { %s4511_s3 = sld [smem:[#allocation30_spill]] }
  0x91   : > { %s3587_s0 = scalar_lea.hbm %s4511_s3, 2048 }
  0x92   : > { %p3588_p1 = scmp.ne.s32.totalorder %s4511_s3, %s3587_s0  ;;  %p3594_p0 = scmp.lt.u32.totalorder %s3587_s0, %s4511_s3 }
  0x94   : > { %p3590_p3 = pnand %p3588_p1, %p3999_p8 }
  0x96   : > { %p3591_p13 = pneg %p3590_p3 }
  0x98   : > { %p3596_p2 = pnand %p3594_p0, %p3591_p13 }
  0x9a   : > { %3599 = shalt.err (!%p3596_p2)
}
  0x9b   : > { %s3600_s29 = scalar_lea.vmem %s591_s23, 2048  ;;  %p3608_p4 = scmp.lt.s32.totalorder %s591_s23, %s591_s23 }
  0x9c   : > { %p3601_p5 = scmp.ne.s32.totalorder %s591_s23, %s3600_s29  ;;  %p3609_p10 = scmp.lt.s32.totalorder %s3600_s29, %s3600_s29 }
  0x9e   : > { %p3603_p7 = pnand %p3601_p5, %p3999_p8  ;;  %p3610_p11 = por %p3609_p10, %p3608_p4 }
  0xa0   : > { %p3604_p9 = pneg %p3603_p7 }
  0xa2   : > { %p3611_p12 = pnand %p3610_p11, %p3604_p9 }
  0xa4   : > { %3614 = shalt.err (!%p3611_p12)
}
  0xa5   : > { %3386 = dma.hbm_to_vmem [thread:$0]  (!%p3983_p6), %s4511_s3, 2048, %s591_s23, [#allocation9], %s4482_s22, %s4482_s22, %s4483_s17  }
  0xa6   : > { %s3820_s11 = smov [#allocation13]   ;;  %s3821_s16 = smov [#allocation16]  }
  0xa7   : > { %s628_s12 = sshll.u32 %s3820_s11, 4  ;;  %s666_s0 = sshll.u32 %s3821_s16, 4  ;;  %s629_s12 = int_to_ptr.vmem [resolvable:$true] %s628_s12  ;;  %s667_s0 = int_to_ptr.vmem [resolvable:$true] %s666_s0 }
  0xa8   : > { %s3615_s27 = scalar_lea.hbm %s4456_s9, 2048 }
  0xa9   : > { %p3616_p1 = scmp.ne.s32.totalorder %s4456_s9, %s3615_s27  ;;  %p3622_p0 = scmp.lt.u32.totalorder %s3615_s27, %s4456_s9 }
  0xab   : > { %p3618_p3 = pnand %p3616_p1, %p3999_p8 }
  0xad   : > { %p3619_p13 = pneg %p3618_p3 }
  0xaf   : > { %p3624_p2 = pnand %p3622_p0, %p3619_p13 }
  0xb1   : > { %3627 = shalt.err (!%p3624_p2)
}
  0xb2   : > { %s3628_s23 = scalar_lea.vmem %s629_s12, 2048  ;;  %p3636_p4 = scmp.lt.s32.totalorder %s629_s12, %s629_s12 }
  0xb3   : > { %p3629_p5 = scmp.ne.s32.totalorder %s629_s12, %s3628_s23  ;;  %p3637_p10 = scmp.lt.s32.totalorder %s3628_s23, %s3628_s23 }
  0xb5   : > { %p3631_p7 = pnand %p3629_p5, %p3999_p8  ;;  %p3638_p11 = por %p3637_p10, %p3636_p4 }
  0xb7   : > { %p3632_p9 = pneg %p3631_p7 }
  0xb9   : > { %p3639_p12 = pnand %p3638_p11, %p3632_p9 }
  0xbb   : > { %3642 = shalt.err (!%p3639_p12)
}
  0xbc   : > { %3392 = dma.hbm_to_vmem [thread:$0]  (!%p3983_p6), %s4456_s9, 2048, %s629_s12, [#allocation12], %s4482_s22, %s4482_s22, %s4483_s17  }
  0xbd   : > { %s3643_s28 = scalar_lea.hbm %s4462_s15, 2048 }
  0xbe   : > { %p3644_p1 = scmp.ne.s32.totalorder %s4462_s15, %s3643_s28  ;;  %p3650_p0 = scmp.lt.u32.totalorder %s3643_s28, %s4462_s15 }
  0xc0   : > { %p3646_p3 = pnand %p3644_p1, %p3999_p8 }
  0xc2   : > { %p3647_p13 = pneg %p3646_p3 }
  0xc4   : > { %p3652_p2 = pnand %p3650_p0, %p3647_p13 }
  0xc6   : > { %3655 = shalt.err (!%p3652_p2)
}
  0xc7   : > { %s3656_s14 = scalar_lea.vmem %s667_s0, 2048  ;;  %p3664_p4 = scmp.lt.s32.totalorder %s667_s0, %s667_s0 }
  0xc8   : > { %p3657_p5 = scmp.ne.s32.totalorder %s667_s0, %s3656_s14  ;;  %p3665_p10 = scmp.lt.s32.totalorder %s3656_s14, %s3656_s14 }
  0xca   : > { %p3659_p7 = pnand %p3657_p5, %p3999_p8  ;;  %p3666_p11 = por %p3665_p10, %p3664_p4 }
  0xcc   : > { %p3660_p9 = pneg %p3659_p7 }
  0xce   : > { %p3667_p12 = pnand %p3666_p11, %p3660_p9 }
  0xd0   : > { %3670 = shalt.err (!%p3667_p12)
}
  0xd1   : > { %3398 = dma.hbm_to_vmem [thread:$0]  (!%p3983_p6), %s4462_s15, 2048, %s667_s0, [#allocation15], %s4482_s22, %s4482_s22, %s4483_s17  }
  0xd2   : > { %s3822_s13 = smov [#allocation19]   ;;  %s3671_s28 = scalar_lea.hbm %s4468_s21, 2048 }
  0xd3   : > { %s704_s5 = sshll.u32 %s3822_s13, 4  ;;  %p3672_p1 = scmp.ne.s32.totalorder %s4468_s21, %s3671_s28  ;;  %s705_s5 = int_to_ptr.vmem [resolvable:$true] %s704_s5 }
  0xd4   : > { %p3678_p0 = scmp.lt.u32.totalorder %s3671_s28, %s4468_s21 }
  0xd5   : > { %p3674_p3 = pnand %p3672_p1, %p3999_p8 }
  0xd7   : > { %p3675_p13 = pneg %p3674_p3 }
  0xd9   : > { %p3680_p2 = pnand %p3678_p0, %p3675_p13 }
  0xdb   : > { %3683 = shalt.err (!%p3680_p2)
}
  0xdc   : > { %s3684_s0 = scalar_lea.vmem %s705_s5, 2048  ;;  %p3692_p4 = scmp.lt.s32.totalorder %s705_s5, %s705_s5 }
  0xdd   : > { %p3685_p5 = scmp.ne.s32.totalorder %s705_s5, %s3684_s0  ;;  %p3693_p10 = scmp.lt.s32.totalorder %s3684_s0, %s3684_s0 }
  0xdf   : > { %p3687_p7 = pnand %p3685_p5, %p3999_p8  ;;  %p3694_p11 = por %p3693_p10, %p3692_p4 }
  0xe1   : > { %p3688_p9 = pneg %p3687_p7 }
  0xe3   : > { %p3695_p12 = pnand %p3694_p11, %p3688_p9 }
  0xe5   : > { %3698 = shalt.err (!%p3695_p12)
}
  0xe6   : > { %3404 = dma.hbm_to_vmem [thread:$0]  (!%p3983_p6), %s4468_s21, 2048, %s705_s5, [#allocation18], %s4482_s22, %s4482_s22, %s4483_s17  }
  0xe7   : > { %s2402_s7 = sadd.s32 4294967294, %s3811_s25   ;;  %s4182_s6 = sadd.s32 1, %s3811_s25  }
  0xe8   : > { %s47_s23 = ssub.s32 %s3811_s25, %s4182_s6  ;;  %s50_s13 = sadd.s32 1, %s3807_s24 }
  0xe9   : > { %p48_p8 = scmp.eq.s32.totalorder %s47_s23, 0  ;;  %p57_p1 = scmp.ne.s32.totalorder %s3807_s24, %s3803_s30 }
  0xea   : > { %p58_p3 = scmp.eq.s32.totalorder %s3811_s25, 0  ;;  %p63_p13 = scmp.ne.s32.totalorder %s3803_s30, %s3799_s4 }
  0xeb   : > { %s4193_s11 = scalar_select %p48_p8, %s3807_s24, %s50_s13  }
  0xec   : > { %p4195_p0 = por %p58_p3, %p57_p1  ;;  %p4513_p2 = scmp.eq.s32.totalorder %s3967_s26, 0 }
  0xed   : > { %p549_p5 = scmp.eq.s32.totalorder %s3967_s26, 1  ;;  %p555_p7 = scmp.eq.s32.totalorder %s2402_s7, 1 }
  0xee   : > { %p4201_p6 = por %p4513_p2, %p63_p13  ;;  %p3421_p9 = scmp.lt.s32.totalorder %s3811_s25, 2 }
  0xef   : > { %s721_s28 = sand.u32 1, %s3807_s24   ;;  %p4208_p4 = por %p549_p5, %p57_p1 }
  0xf0   : > { %p4212_p10 = por %p555_p7, %p63_p13  ;;  %s2413_s1 = sshll.u32 %s721_s28, 6 }
  0xf1   : > { %s4515_s20 = scalar_select %p4208_p4, 1, 0 }
  0xf2   : > { %s4516_s27 = scalar_select %p4212_p10, 1, 0 }
  0xf3   : > { %s2451_s29 = sshll.u32 %s3811_s25, 10  ;;  %s4517_s12 = sld [smem:[#allocation27_spill]] }
  0xf4   : > { %s725_s7 = scalar_lea.vmem [#allocation5], %s2413_s1  ;;  %p4226_p11 = pnand %p3421_p9, %p4195_p0 }
  0xf5   : > { %s732_s13 = sshll.u32 %s725_s7, 4  ;;  %s4230_s17 = scalar_lea.sflag [#allocation6], %s721_s28  ;;  %s4222_s13 = int_to_ptr.vmem [resolvable:$true] %s732_s13 }
  0xf6   : > { %p3701_p8 = pneg %p4226_p11 }
  0xf9   : > { %s4220_s23 = scalar_lea.hbm %s4517_s12, %s2451_s29  ;;  %s3704_s16 = scalar_lea.hbm %s4517_s12, 2048 }
  0xfa   : > { %s3699_s0 = scalar_lea.hbm %s4220_s23, 1024  ;;  %p3705_p13 = scmp.lt.u32.totalorder %s4220_s23, %s4517_s12 }
  0xfb   : > { %p3700_p12 = scmp.ne.s32.totalorder %s4220_s23, %s3699_s0  ;;  %p3706_p0 = scmp.lt.u32.totalorder %s3704_s16, %s3699_s0 }
  0xfc   : > { %p3708_p5 = scmp.lt.u32.totalorder %s3699_s0, %s4220_s23 }
  0xfd   : > { %p3702_p1 = pnand %p3701_p8, %p3700_p12  ;;  %p3707_p2 = por %p3706_p0, %p3705_p13 }
  0xff   : > { %p3703_p3 = pneg %p3702_p1  ;;  %p3709_p7 = por %p3708_p5, %p3707_p2 }
 0x101   : > { %p3710_p9 = pnand %p3709_p7, %p3703_p3 }
 0x103   : > { %3713 = shalt.err (!%p3710_p9)
}
 0x104   : > { %s3714_s28 = scalar_lea.vmem %s4222_s13, 1024  ;;  %s3823_s1 = smov [#allocation5]  }
 0x105   : > { %p3715_p12 = scmp.ne.s32.totalorder %s4222_s13, %s3714_s28  ;;  %s3719_s29 = sshll.u32 %s3823_s1, 4  ;;  %s3720_s29 = int_to_ptr.vmem [resolvable:$false] %s3719_s29 }
 0x106   : > { %s3721_s14 = scalar_lea.vmem %s3720_s29, 2048  ;;  %p3722_p4 = scmp.lt.s32.totalorder %s4222_s13, %s3720_s29 }
 0x107   : > { %p3717_p1 = pnand %p3715_p12, %p3701_p8  ;;  %p3723_p13 = scmp.lt.s32.totalorder %s3721_s14, %s3714_s28 }
 0x109   : > { %p3718_p10 = pneg %p3717_p1  ;;  %p3724_p0 = por %p3723_p13, %p3722_p4 }
 0x10b   : > { %p3725_p2 = pnand %p3724_p0, %p3718_p10 }
 0x10d   : > { %3728 = shalt.err (!%p3725_p2)
}
 0x10e   : > { %s4519_s0 = smov 8   ;;  %s4520_s16 = smov 128  }
 0x10f   : > { %3408 = dma.hbm_to_vmem [thread:$0]  (!%p4226_p11), %s4220_s23, 1024, %s4222_s13, %s4230_s17, %s4520_s16, %s4520_s16, %s4519_s0  }
 0x110   : > { %p4521_p8 = scmp.ne.s32.totalorder %s4505_s2, 0 }
 0x111   : > { %s4264_s7 = sand.u32 (!%p4521_p8), 1, %s3803_s30  }
 0x112   : > { %744 = sbr.rel (%p4521_p8) target bundleno = 2250 (0x8ca), region = 112  ;;  %s2417_s28 = sshll.u32 (!%p4521_p8), %s4264_s7, 6 }
 0x113   : > { %s747_s1 = scalar_lea.sflag (!%p4521_p8), [#allocation6], %s4264_s7  ;;  %s4268_s29 = scalar_lea.vmem (!%p4521_p8), [#allocation5], %s2417_s28 }
 0x119   : > { %3774 = dma.done.wait (%p4201_p6), %s747_s1, 1024  }
 0x11a   : > { %3776 = vsyncadd (%p4201_p6), %s747_s1, 4294966272  ;;  %p4522_p4 = scmp.eq.s32.totalorder %s3967_s26, 0 }
 0x11c   : > { %3778 = dma.done.wait (%p4522_p4), [#allocation9], 8192   ;;  %p4523_p10 = pmov %p4522_p4 }
 0x11d   : > { %p4524_p11 = pmov %p4522_p4 }
 0x11e   : > { %3780 = vsyncadd (%p4523_p10), [#allocation9], 4294959104 }
 0x11f   : > { %3782 = dma.done.wait (%p4524_p11), [#allocation12], 4096   ;;  %p4525_p3 = pmov %p4522_p4 }
 0x121   : > { %3784 = vsyncadd (%p4525_p3), [#allocation12], 4294963200  ;;  %p4526_p5 = pmov %p4525_p3 }
 0x122   : > { %p4527_p7 = pmov %p4525_p3 }
 0x123   : > { %3786 = dma.done.wait (%p4526_p5), [#allocation15], 4096  }
 0x124   : > { %3788 = vsyncadd (%p4527_p7), [#allocation15], 4294963200  ;;  %p4528_p6 = pmov %p4525_p3 }
 0x125   : > { %p4529_p9 = pmov %p4525_p3 }
 0x126   : > { %3790 = dma.done.wait (%p4528_p6), [#allocation18], 4096  }
 0x127   : > { %3792 = vsyncadd (%p4529_p9), [#allocation18], 4294963200  ;;  %v3824_v0 = vmov 0.0   ;;  %v900_v1 = vld [vmem:[#allocation8] sm:$0xff]  ;;  %v901_v2 = vld [vmem:[#allocation8 + $0x8] sm:$0xff]  ;;  %s4530_s17 = sld [smem:[#allocation29_spill]] }
 0x128   : > { %860 = vst [vmem:[#allocation3 + $0x30] sm:$0xff] %v3824_v0  ;;  %844 = vst [vmem:[#allocation2] sm:$0xff] %v3824_v0  ;;  %v902_v3 = vld [vmem:[#allocation8 + $0x10] sm:$0xff]  ;;  %v3012_v4 = vpack.c.bf16 %v901_v2, %v900_v1  ;;  %v903_v5 = vld [vmem:[#allocation8 + $0x18] sm:$0xff]  ;;  %s4531_s13 = sld [smem:[#allocation31_spill]]  ;;  %s4532_s16 = sld [smem:[#allocation32_spill]] }
 0x129   : > { %854 = vst [vmem:[#allocation3] sm:$0xff] %v3824_v0  ;;  %864 = vst [vmem:[#allocation4] sm:$0xff] %v3824_v0  ;;  %v3016_v6 = vpack.c.bf16 %v903_v5, %v902_v3  ;;  %v904_v7 = vld [vmem:[#allocation8 + $0x20] sm:$0xff]  ;;  %v905_v8 = vld [vmem:[#allocation8 + $0x28] sm:$0xff]  ;;  %s4533_s22 = sld [smem:[#allocation33_spill]]  ;;  %s4534_s8 = sld [smem:[#allocation35_spill]] }
 0x12a   : > { %869 = vst [vmem:[#allocation4 + $0x28] sm:$0xff] %v3824_v0  ;;  %3013 = vmatprep.subr.bf16.mxu0 %v3012_v4  ;;  %v3020_v9 = vpack.c.bf16 %v905_v8, %v904_v7  ;;  %v874_v10 = vld [vmem:[%s4268_s29] sm:$0xff]  ;;  %v875_v11 = vld [vmem:[%s4268_s29 + $0x8] sm:$0xff]  ;;  %v906_v12 = vld [vmem:[#allocation8 + $0x30] sm:$0xff]  ;;  %s4536_s23 = sld [smem:[#allocation37_spill]]  ;;  %s4537_s1 = sld [smem:[#allocation39_spill]] }
 0x12b   : > { %1384 = vst [vmem:[#allocation4 + $0x28] sm:$0x3] %v3824_v0  ;;  %3015 = vmatpush3.bf16.msra.mxu0 %v3012_v4  ;;  %v907_v13 = vld [vmem:[#allocation8 + $0x38] sm:$0xff]  ;;  %882 = vst [vmem:[#allocation2 + $0x8] sm:$0xff] %v874_v10  ;;  %v876_v14 = vld [vmem:[%s4268_s29 + $0x10] sm:$0xff]  ;;  %s4540_s28 = sld [smem:[#allocation41_spill]] }
 0x12c   : > { %3017 = vmatprep.subr.bf16.mxu0 %v3016_v6  ;;  %883 = vst [vmem:[#allocation2 + $0x10] sm:$0xff] %v875_v11  ;;  %v877_v15 = vld [vmem:[%s4268_s29 + $0x18] sm:$0xff]  ;;  %884 = vst [vmem:[#allocation2 + $0x18] sm:$0xff] %v876_v14  ;;  %v3024_v16 = vpack.c.bf16 %v907_v13, %v906_v12  ;;  %v908_v17 = vld [vmem:[#allocation8 + $0x40] sm:$0xff]  ;;  %s4541_s2 = sld [smem:[#allocation43_spill]]  ;;  %s4542_s5 = sld [smem:[#allocation44_spill]] }
 0x12d   : > { %885 = vst [vmem:[#allocation2 + $0x20] sm:$0xff] %v877_v15  ;;  %v909_v18 = vld [vmem:[#allocation8 + $0x48] sm:$0xff]  ;;  %v878_v19 = vld [vmem:[%s4268_s29 + $0x20] sm:$0xff]  ;;  %v880_v21 = vld [vmem:[%s4268_s29 + $0x30] sm:$0xff]  ;;  %p4544_p1 = scmp.ne.s32.totalorder %s4515_s20, 0 }
 0x12e   : > { %v879_v20 = vld [vmem:[%s4268_s29 + $0x28] sm:$0xff]  ;;  %886 = vst [vmem:[#allocation2 + $0x28] sm:$0xff] %v878_v19  ;;  %v3028_v22 = vpack.c.bf16 %v909_v18, %v908_v17  ;;  %v881_v24 = vld [vmem:[%s4268_s29 + $0x38] sm:$0xff]  ;;  %888 = vst [vmem:[#allocation2 + $0x38] sm:$0xff] %v880_v21  ;;  %s4535_s29 = sld [smem:[#allocation36_spill]] }
 0x12f   : > { %3019 = vmatpush3.bf16.msra.mxu0 %v3016_v6  ;;  %887 = vst [vmem:[#allocation2 + $0x30] sm:$0xff] %v879_v20  ;;  %v910_v25 = vld [vmem:[#allocation8 + $0x50] sm:$0xff]  ;;  %v911_v26 = vld [vmem:[#allocation8 + $0x58] sm:$0xff]  ;;  %889 = vst [vmem:[#allocation2 + $0x40] sm:$0xff] %v881_v24 }
 0x130   : > { %3021 = vmatprep.subr.bf16.mxu0 %v3020_v9  ;;  %v3032_v27 = vpack.c.bf16 %v911_v26, %v910_v25  ;;  %v912_v28 = vld [vmem:[#allocation8 + $0x60] sm:$0xff]  ;;  %v913_v29 = vld [vmem:[#allocation8 + $0x68] sm:$0xff]  ;;  %v914_v31 = vld [vmem:[#allocation8 + $0x70] sm:$0xff] }
 0x131   : > { %v3036_v30 = vpack.c.bf16 %v913_v29, %v912_v28  ;;  %v915_v32 = vld [vmem:[#allocation8 + $0x78] sm:$0xff]  ;;  %v1268_v36 = vld [vmem:[#allocation10] sm:$0xff]  ;;  %v1269_v37 = vld [vmem:[#allocation10 + $0x8] sm:$0xff] }
 0x132   : > { %v1270_v38 = vld [vmem:[#allocation10 + $0x10] sm:$0xff]  ;;  %v1271_v39 = vld [vmem:[#allocation10 + $0x18] sm:$0xff]  ;;  %v3108_v40 = vpack.c.bf16 %v1269_v37, %v1268_v36  ;;  %v3040_v42 = vpack.c.bf16 %v915_v32, %v914_v31  ;;  %v1272_v43 = vld [vmem:[#allocation10 + $0x20] sm:$0xff] }
 0x133   : > { %3023 = vmatpush3.bf16.msra.mxu0 %v3020_v9  ;;  %v893_v23 = vld [vmem:[#allocation2 + $0x7] ss:$2 sm:$0xff]  ;;  %v3112_v41 = vpack.c.bf16 %v1271_v39, %v1270_v38  ;;  %v1273_v44 = vld [vmem:[#allocation10 + $0x28] sm:$0xff]  ;;  %v1012_v57 = vld [vmem:[#allocation2 + $0x8] ss:$2 sm:$0xff] }
 0x134   : > { %3025 = vmatprep.subr.bf16.mxu0 %v3024_v16  ;;  %2676 = vmatprep.mubr.f32.mxu0 %v893_v23  ;;  %v1020_v45 = vld [vmem:[#allocation8 + $0x80] sm:$0xff]  ;;  %v1021_v46 = vld [vmem:[#allocation8 + $0x88] sm:$0xff]  ;;  %v3116_v47 = vpack.c.bf16 %v1273_v44, %v1272_v43  ;;  %v1022_v49 = vld [vmem:[#allocation8 + $0x90] sm:$0xff] }
 0x135   : > { %3109 = vmatprep.subr.bf16.mxu1 %v3108_v40  ;;  %v3044_v48 = vpack.c.bf16 %v1021_v46, %v1020_v45  ;;  %v1023_v50 = vld [vmem:[#allocation8 + $0x98] sm:$0xff]  ;;  %v895_v51 = vld [vmem:[#allocation2 + $0x17] ss:$2 sm:$0xff]  ;;  %v1014_v15 = vld [vmem:[#allocation2 + $0x18] ss:$2 sm:$0xff] }
 0x136   : > { %v897_v33 = vld [vmem:[#allocation2 + $0x27] ss:$2 sm:$0xff]  ;;  %v4304_v34 = vld [vmem:[#allocation2 + $0x28] ss:$2 sm:$0xff]  ;;  %3111 = vmatpush3.bf16.msra.mxu1 %v3108_v40  ;;  %v3048_v52 = vpack.c.bf16 %v1023_v50, %v1022_v49  ;;  %v1025_v54 = vld [vmem:[#allocation8 + $0xa8] sm:$0xff] }
 0x137   : > { %3027 = vmatpush3.bf16.msra.mxu0 %v3024_v16  ;;  %v4306_v35 = vld [vmem:[#allocation2 + $0x29] ss:$2 sm:$0xff]  ;;  %3113 = vmatprep.subr.bf16.mxu1 %v3112_v41  ;;  %v1026_v58 = vld [vmem:[#allocation8 + $0xb0] sm:$0xff]  ;;  %v1029_v62 = vld [vmem:[#allocation8 + $0xc8] sm:$0xff] }
 0x138   : > { %3029 = vmatprep.subr.bf16.mxu0 %v3028_v22  ;;  %1451 = vst [vmem:[#allocation2 + $0x28] sm:$0x3] %v3824_v0  ;;  %v1024_v53 = vld [vmem:[#allocation8 + $0xa0] sm:$0xff]  ;;  %v1027_v59 = vld [vmem:[#allocation8 + $0xb8] sm:$0xff]  ;;  %v1030_v1 = vld [vmem:[#allocation8 + $0xd0] sm:$0xff] }
 0x139   : > { %1689 = vst [vmem:[#allocation2 + $0x28] sm:$0x3] %v3824_v0  ;;  %v899_v55 = vld [vmem:[#allocation2 + $0x37] ss:$2 sm:$0xff]  ;;  %v3052_v56 = vpack.c.bf16 %v1025_v54, %v1024_v53  ;;  %v3056_v60 = vpack.c.bf16 %v1027_v59, %v1026_v58  ;;  %v1031_v2 = vld [vmem:[#allocation8 + $0xd8] sm:$0xff] }
 0x13a   : > { %3115 = vmatpush3.bf16.msra.mxu1 %v3112_v41  ;;  %v1028_v61 = vld [vmem:[#allocation8 + $0xc0] sm:$0xff]  ;;  %v3064_v3 = vpack.c.bf16 %v1031_v2, %v1030_v1  ;;  %v1033_v5 = vld [vmem:[#allocation8 + $0xe8] sm:$0xff]  ;;  %v1034_v7 = vld [vmem:[#allocation8 + $0xf0] sm:$0xff] }
 0x13b   : > { %3031 = vmatpush3.bf16.msra.mxu0 %v3028_v22  ;;  %3117 = vmatprep.subr.bf16.mxu1 %v3116_v47  ;;  %v3060_v63 = vpack.c.bf16 %v1029_v62, %v1028_v61  ;;  %v1032_v4 = vld [vmem:[#allocation8 + $0xe0] sm:$0xff]  ;;  %v1035_v8 = vld [vmem:[#allocation8 + $0xf8] sm:$0xff]  ;;  %v1135_v11 = vld [vmem:[#allocation8 + $0x108] sm:$0xff] }
 0x13c   : > { %3033 = vmatprep.subr.bf16.mxu0 %v3032_v27  ;;  %v3068_v6 = vpack.c.bf16 %v1033_v5, %v1032_v4  ;;  %v3072_v9 = vpack.c.bf16 %v1035_v8, %v1034_v7  ;;  %v1134_v10 = vld [vmem:[#allocation8 + $0x100] sm:$0xff]  ;;  %v1136_v13 = vld [vmem:[#allocation8 + $0x110] sm:$0xff]  ;;  %v1137_v14 = vld [vmem:[#allocation8 + $0x118] sm:$0xff] }
 0x13d   : > { %v3076_v12 = vpack.c.bf16 %v1135_v11, %v1134_v10  ;;  %v3080_v16 = vpack.c.bf16 %v1137_v14, %v1136_v13  ;;  %v1138_v17 = vld [vmem:[#allocation8 + $0x120] sm:$0xff]  ;;  %v1139_v18 = vld [vmem:[#allocation8 + $0x128] sm:$0xff]  ;;  %v1140_v22 = vld [vmem:[#allocation8 + $0x130] sm:$0xff] }
 0x13e   : > { %3119 = vmatpush3.bf16.msra.mxu1 %v3116_v47  ;;  %v1018_v19 = vld [vmem:[#allocation2 + $0x38] ss:$2 sm:$0xff]  ;;  %v3084_v20 = vpack.c.bf16 %v1139_v18, %v1138_v17  ;;  %v1126_v21 = vld [vmem:[#allocation2 + $0x9] ss:$2 sm:$0xff]  ;;  %v1128_v38 = vld [vmem:[#allocation2 + $0x19] ss:$2 sm:$0xff] }
 0x13f   : > { %3035 = vmatpush3.bf16.msra.mxu0 %v3032_v27  ;;  %v1141_v23 = vld [vmem:[#allocation8 + $0x138] sm:$0xff]  ;;  %v1142_v25 = vld [vmem:[#allocation8 + $0x140] sm:$0xff]  ;;  %v1143_v26 = vld [vmem:[#allocation8 + $0x148] sm:$0xff] }
 0x140   : > { %3037 = vmatprep.subr.bf16.mxu0 %v3036_v30  ;;  %v3088_v24 = vpack.c.bf16 %v1141_v23, %v1140_v22  ;;  %v3092_v27 = vpack.c.bf16 %v1143_v26, %v1142_v25  ;;  %v1144_v28 = vld [vmem:[#allocation8 + $0x150] sm:$0xff]  ;;  %v1145_v29 = vld [vmem:[#allocation8 + $0x158] sm:$0xff]  ;;  %v1146_v31 = vld [vmem:[#allocation8 + $0x160] sm:$0xff] }
 0x141   : > { %v1147_v32 = vld [vmem:[#allocation8 + $0x168] sm:$0xff]  ;;  %v1149_v36 = vld [vmem:[#allocation8 + $0x178] sm:$0xff]  ;;  %v1274_v40 = vld [vmem:[#allocation10 + $0x30] sm:$0xff] }
 0x142   : > { %v1132_v39 = vld [vmem:[#allocation2 + $0x39] ss:$2 sm:$0xff]  ;;  %v1275_v41 = vld [vmem:[#allocation10 + $0x38] sm:$0xff]  ;;  %v1276_v43 = vld [vmem:[#allocation10 + $0x40] sm:$0xff] }
 0x143   : > { %3039 = vmatpush3.bf16.msra.mxu0 %v3036_v30  ;;  %v3096_v30 = vpack.c.bf16 %v1145_v29, %v1144_v28  ;;  %v1277_v44 = vld [vmem:[#allocation10 + $0x48] sm:$0xff]  ;;  %v1278_v46 = vld [vmem:[#allocation10 + $0x50] sm:$0xff]  ;;  %v1279_v47 = vld [vmem:[#allocation10 + $0x58] sm:$0xff] }
 0x144   : > { %3041 = vmatprep.subr.bf16.mxu0 %v3040_v42  ;;  %v3124_v45 = vpack.c.bf16 %v1277_v44, %v1276_v43  ;;  %v1280_v49 = vld [vmem:[#allocation10 + $0x60] sm:$0xff]  ;;  %v1281_v50 = vld [vmem:[#allocation10 + $0x68] sm:$0xff]  ;;  %v2426_v54 = vld [vmem:[%s4530_s17] ss:$0 sm:$0xff]  ;;  %s4538_s17 = sld [smem:[#allocation40_spill]] }
 0x145   : > { %v1458_v23 = vld [vmem:[#allocation11 + $0x10] sm:$0xff]  ;;  %v1460_v26 = vld [vmem:[#allocation11 + $0x20] sm:$0xff]  ;;  %v1471_v43 = vld [vmem:[#allocation11 + $0x78] sm:$0xff] }
 0x146   : > { %v1462_v29 = vld [vmem:[#allocation11 + $0x30] sm:$0xff] }
 0x147   : > { %3043 = vmatpush3.bf16.msra.mxu0 %v3040_v42  ;;  %v3120_v42 = vpack.c.bf16 %v1275_v41, %v1274_v40  ;;  %v1469_v40 = vld [vmem:[#allocation11 + $0x68] sm:$0xff] }
 0x148   : > { %3045 = vmatprep.subr.bf16.mxu0 %v3044_v48 }
 0x149   : > { %3121 = vmatprep.subr.bf16.mxu1 %v3120_v42 }
 0x14a   : > { %2677 = vmatmul.mubr.f32.vlgmr.msra.gmra.mrb[0].mxu0 %v895_v51  ;;  %3123 = vmatpush3.bf16.msra.mxu1 %v3120_v42  ;;  %v1282_v51 = vld [vmem:[#allocation10 + $0x70] sm:$0xff] }
 0x14b   : > { %3047 = vmatpush3.bf16.msra.mxu0 %v3044_v48  ;;  %2679 = vmatprep.mubr.f32.mxu0 %v897_v33  ;;  %v3100_v33 = vpack.c.bf16 %v1147_v32, %v1146_v31  ;;  %v3128_v48 = vpack.c.bf16 %v1279_v47, %v1278_v46  ;;  %v1464_v32 = vld [vmem:[#allocation11 + $0x40] sm:$0xff]  ;;  %v1470_v42 = vld [vmem:[#allocation11 + $0x70] sm:$0xff]  ;;  %v1574_v46 = vld [vmem:[#allocation13 + $0x8] sm:$0xff] }
 0x14c   : > { %3049 = vmatprep.subr.bf16.mxu0 %v3048_v52  ;;  %3125 = vmatprep.subr.bf16.mxu1 %v3124_v45  ;;  %v3168_v44 = vpack.c.bf16 %v1471_v43, %v1470_v42 }
 0x14e   : > { %2680 = vmatmul.mubr.f32.gmra.mrb[2].mxu0 %v899_v55  ;;  %3127 = vmatpush3.bf16.msra.mxu1 %v3124_v45  ;;  %v1573_v45 = vld [vmem:[#allocation13] sm:$0xff] }
 0x14f   : > { %3051 = vmatpush3.bf16.msra.mxu0 %v3048_v52  ;;  %2714 = vmatprep.mubr.f32.mxu0 %v1012_v57  ;;  %v1283_v52 = vld [vmem:[#allocation10 + $0x78] sm:$0xff]  ;;  %v4317_v47 = vpack.c.bf16 %v1574_v46, %v1573_v45 }
 0x150   : > { %3053 = vmatprep.subr.bf16.mxu0 %v3052_v56  ;;  %3129 = vmatprep.subr.bf16.mxu1 %v3128_v48  ;;  %v3136_v53 = vpack.c.bf16 %v1283_v52, %v1282_v51  ;;  %v1580_v45 = vld [vmem:[#allocation13 + $0x38] sm:$0xff] }
 0x152   : > { %3131 = vmatpush3.bf16.msra.mxu1 %v3128_v48  ;;  %v2427_v48 = vld [vmem:[%s4531_s13] ss:$0 sm:$0xff]  ;;  %s4539_s13 = sld [smem:[#allocation42_spill]] }
 0x153   : > { %3055 = vmatpush3.bf16.msra.mxu0 %v3052_v56 }
 0x154   : > { %3057 = vmatprep.subr.bf16.mxu0 %v3056_v60 }
 0x157   : > { %3059 = vmatpush3.bf16.msra.mxu0 %v3056_v60 }
 0x158   : > { %3061 = vmatprep.subr.bf16.mxu0 %v3060_v63 }
 0x15b   : > { %3063 = vmatpush3.bf16.msra.mxu0 %v3060_v63 }
 0x15c   : > { %3065 = vmatprep.subr.bf16.mxu0 %v3064_v3 }
 0x15f   : > { %3067 = vmatpush3.bf16.msra.mxu0 %v3064_v3 }
 0x160   : > { %3069 = vmatprep.subr.bf16.mxu0 %v3068_v6 }
 0x163   : > { %3071 = vmatpush3.bf16.msra.mxu0 %v3068_v6 }
 0x164   : > { %3073 = vmatprep.subr.bf16.mxu0 %v3072_v9 }
 0x167   : > { %3075 = vmatpush3.bf16.msra.mxu0 %v3072_v9 }
 0x168   : > { %3077 = vmatprep.subr.bf16.mxu0 %v3076_v12 }
 0x16a   : > { %2715 = vmatmul.mubr.f32.vlgmr.msra.gmra.mrb[0].mxu0 %v1014_v15 }
 0x16b   : > { %3079 = vmatpush3.bf16.msra.mxu0 %v3076_v12  ;;  %2717 = vmatprep.mubr.f32.mxu0 %v4304_v34  ;;  %v1148_v34 = vld [vmem:[#allocation8 + $0x170] sm:$0xff] }
 0x16c   : > { %3081 = vmatprep.subr.bf16.mxu0 %v3080_v16  ;;  %v3104_v37 = vpack.c.bf16 %v1149_v36, %v1148_v34  ;;  %v1466_v36 = vld [vmem:[#allocation11 + $0x50] sm:$0xff] }
 0x16e   : > { %2718 = vmatmul.mubr.f32.gmra.mrb[2].mxu0 %v1018_v19 }
 0x16f   : > { %3083 = vmatpush3.bf16.msra.mxu0 %v3080_v16  ;;  %2752 = vmatprep.mubr.f32.mxu0 %v1126_v21  ;;  %v1457_v21 = vld [vmem:[#allocation11 + $0x8] sm:$0xff] }
 0x170   : > { %3085 = vmatprep.subr.bf16.mxu0 %v3084_v20 }
 0x173   : > { %3087 = vmatpush3.bf16.msra.mxu0 %v3084_v20  ;;  %v1456_v20 = vld [vmem:[#allocation11] sm:$0xff] }
 0x174   : > { %3089 = vmatprep.subr.bf16.mxu0 %v3088_v24  ;;  %v3140_v22 = vpack.c.bf16 %v1457_v21, %v1456_v20 }
 0x177   : > { %3091 = vmatpush3.bf16.msra.mxu0 %v3088_v24  ;;  %v1459_v24 = vld [vmem:[#allocation11 + $0x18] sm:$0xff] }
 0x178   : > { %3093 = vmatprep.subr.bf16.mxu0 %v3092_v27  ;;  %v3144_v25 = vpack.c.bf16 %v1459_v24, %v1458_v23 }
 0x17b   : > { %3095 = vmatpush3.bf16.msra.mxu0 %v3092_v27  ;;  %v1461_v27 = vld [vmem:[#allocation11 + $0x28] sm:$0xff] }
 0x17c   : > { %3097 = vmatprep.subr.bf16.mxu0 %v3096_v30  ;;  %v3148_v28 = vpack.c.bf16 %v1461_v27, %v1460_v26  ;;  %v1575_v26 = vld [vmem:[#allocation13 + $0x10] sm:$0xff]  ;;  %v1576_v27 = vld [vmem:[#allocation13 + $0x18] sm:$0xff] }
 0x17f   : > { %3099 = vmatpush3.bf16.msra.mxu0 %v3096_v30  ;;  %v1463_v30 = vld [vmem:[#allocation11 + $0x38] sm:$0xff] }
 0x180   : > { %3101 = vmatprep.subr.bf16.mxu0 %v3100_v33  ;;  %v3152_v31 = vpack.c.bf16 %v1463_v30, %v1462_v29 }
 0x183   : > { %3103 = vmatpush3.bf16.msra.mxu0 %v3100_v33  ;;  %v1465_v33 = vld [vmem:[#allocation11 + $0x48] sm:$0xff] }
 0x184   : > { %3105 = vmatprep.subr.bf16.mxu0 %v3104_v37  ;;  %v3156_v34 = vpack.c.bf16 %v1465_v33, %v1464_v32 }
 0x187   : > { %3107 = vmatpush3.bf16.msra.mxu0 %v3104_v37  ;;  %v1467_v37 = vld [vmem:[#allocation11 + $0x58] sm:$0xff] }
 0x18a   : > { %2753 = vmatmul.mubr.f32.vlgmr.msra.gmra.mrb[0].mxu0 %v1128_v38  ;;  %v3160_v38 = vpack.c.bf16 %v1467_v37, %v1466_v36  ;;  %v3176_v36 = vpack.c.bf16 %v1576_v27, %v1575_v26  ;;  %v1752_v26 = vld [vmem:[#allocation14 + $0x78] sm:$0xff] }
 0x18b   : > { %2755 = vmatprep.mubr.f32.mxu0 %v4306_v35  ;;  %v3132_v35 = vpack.c.bf16 %v1281_v50, %v1280_v49 }
 0x18d   : > { %3133 = vmatprep.subr.bf16.mxu1 %v3132_v35 }
 0x18e   : > { %2756 = vmatmul.mubr.f32.gmra.mrb[2].mxu0 %v1132_v39  ;;  %3135 = vmatpush3.bf16.msra.mxu1 %v3132_v35  ;;  %v1468_v39 = vld [vmem:[#allocation11 + $0x60] sm:$0xff] }
 0x18f   : > { %3137 = vmatprep.subr.bf16.mxu1 %v3136_v53  ;;  %v3164_v41 = vpack.c.bf16 %v1469_v40, %v1468_v39  ;;  %v1577_v39 = vld [vmem:[#allocation13 + $0x20] sm:$0xff]  ;;  %v1578_v40 = vld [vmem:[#allocation13 + $0x28] sm:$0xff] }
 0x190   : > { %v3180_v43 = vpack.c.bf16 %v1578_v40, %v1577_v39  ;;  %v1847_v39 = vld [vmem:[#allocation16 + $0x38] sm:$0xff] }
 0x192   : > { %3139 = vmatpush3.bf16.msra.mxu1 %v3136_v53 }
 0x193   : > { %3141 = vmatprep.subr.bf16.mxu1 %v3140_v22 }
 0x25d   : > { %v2754_v55 = vpop.f32.mrb[0].mxu0 }
 0x25e   : > { %v3332_v56 = vadd.f32 %v2754_v55, %v2426_v54  ;;  %v1216_v57 = vpop.f32.mrb[1].mxu0 }
 0x25f   : > { %v3333_v58 = vadd.f32 %v2426_v54, %v1216_v57 }
 0x260   : > { %v1240_v59 = vadd.f32 3.0, %v3332_v56 }
 0x261   : > { %v1239_v60 = vadd.f32 3.0, %v3333_v58  ;;  %v2757_v61 = vpop.f32.mrb[2].mxu0 }
 0x262   : > { %v1244_v62 = vmax.f32 %v1240_v59, 0.0  ;;  %v3334_v63 = vadd.f32 %v2757_v61, %v2426_v54  ;;  %v1226_v1 = vpop.f32.mrb[3].mxu0  ;;  %v2430_v61 = vld [vmem:[%s4532_s16 + $0x1] ss:$0 sm:$0xff] }
 0x263   : > { %v1243_v2 = vmax.f32 %v1239_v60, 0.0  ;;  %v3335_v3 = vadd.f32 %v2426_v54, %v1226_v1  ;;  %v2428_v60 = vld [vmem:[%s4532_s16] ss:$0 sm:$0xff] }
 0x264   : > { %v1248_v4 = vmin.f32 %v1244_v62, 6.0  ;;  %v1242_v5 = vadd.f32 3.0, %v3334_v63  ;;  %v2429_v62 = vld [vmem:[%s4533_s22] ss:$0 sm:$0xff] }
 0x265   : > { %v1247_v6 = vmin.f32 %v1243_v2, 6.0  ;;  %v1241_v7 = vadd.f32 3.0, %v3335_v3 }
 0x266   : > { %v1252_v8 = vmul.f32 %v3332_v56, %v1248_v4  ;;  %v1246_v9 = vmax.f32 %v1242_v5, 0.0  ;;  %v2431_v5 = vld [vmem:[%s4532_s16 + $0x2] ss:$0 sm:$0xff] }
 0x267   : > { %v1251_v10 = vmul.f32 %v3333_v58, %v1247_v6  ;;  %v1245_v11 = vmax.f32 %v1241_v7, 0.0 }
 0x268   : > { %v1250_v12 = vmin.f32 %v1246_v9, 6.0  ;;  %v1256_v15 = vmul.f32 0.16666667, %v1252_v8 }
 0x269   : > { %v1255_v13 = vmul.f32 0.16666667, %v1251_v10  ;;  %v1249_v14 = vmin.f32 %v1245_v11, 6.0 }
 0x26a   : > { %v1254_v16 = vmul.f32 %v3334_v63, %v1250_v12 }
 0x26b   : > { %v1253_v17 = vmul.f32 %v3335_v3, %v1249_v14  ;;  %2790 = vmatprep.mubr.f32.mxu1 %v1255_v13 }
 0x26c   : > { %v1258_v18 = vmul.f32 0.16666667, %v1254_v16  ;;  %2791 = vmatmul.mubr.f32.vlgmr.msra.gmra.mrb[0].mxu1 %v1256_v15 }
 0x26d   : > { %v1257_v19 = vmul.f32 0.16666667, %v1253_v17  ;;  %3143 = vmatpush3.bf16.msra.mxu1 %v3140_v22 }
 0x26e   : > { %3145 = vmatprep.subr.bf16.mxu1 %v3144_v25 }
 0x26f   : > { %1261 = vst [vmem:[#allocation3 + $0x18] sm:$0xff] %v1257_v19  ;;  %2793 = vmatprep.mubr.f32.mxu1 %v1257_v19 }
 0x270   : > { %1734 = vst [vmem:[#allocation3 + $0x18] sm:$0x3] %v3824_v0  ;;  %2794 = vmatmul.mubr.f32.gmra.mrb[2].mxu1 %v1258_v18 }
 0x271   : > { %1942 = vst [vmem:[#allocation3 + $0x18] sm:$0x3] %v3824_v0  ;;  %3147 = vmatpush3.bf16.msra.mxu1 %v3144_v25 }
 0x272   : > { %3149 = vmatprep.subr.bf16.mxu1 %v3148_v28 }
 0x275   : > { %3151 = vmatpush3.bf16.msra.mxu1 %v3148_v28 }
 0x276   : > { %3153 = vmatprep.subr.bf16.mxu1 %v3152_v31 }
 0x279   : > { %3155 = vmatpush3.bf16.msra.mxu1 %v3152_v31 }
 0x27a   : > { %3157 = vmatprep.subr.bf16.mxu1 %v3156_v34 }
 0x27d   : > { %3159 = vmatpush3.bf16.msra.mxu1 %v3156_v34 }
 0x27e   : > { %3161 = vmatprep.subr.bf16.mxu1 %v3160_v38 }
 0x281   : > { %3163 = vmatpush3.bf16.msra.mxu1 %v3160_v38 }
 0x282   : > { %3165 = vmatprep.subr.bf16.mxu1 %v3164_v41 }
 0x285   : > { %3167 = vmatpush3.bf16.msra.mxu1 %v3164_v41 }
 0x286   : > { %3169 = vmatprep.subr.bf16.mxu1 %v3168_v44 }
 0x289   : > { %3171 = vmatpush3.bf16.msra.mxu1 %v3168_v44  ;;  %v1579_v44 = vld [vmem:[#allocation13 + $0x30] sm:$0xff] }
 0x28a   : > { %3173 = vmatprep.subr.bf16.mxu1 %v4317_v47  ;;  %v3184_v46 = vpack.c.bf16 %v1580_v45, %v1579_v44  ;;  %v2433_v44 = vld [vmem:[%s4457_s10] ss:$0 sm:$0xff] }
 0x33f   : > { %v2792_v49 = vpop.f32.mrb[0].mxu1 }
 0x340   : > { %v1363_v50 = vadd.f32 %v2792_v49, %v2427_v48  ;;  %v1357_v35 = vpop.f32.mrb[1].mxu1  ;;  %v1582_v49 = vld [vmem:[#allocation13 + $0x48] sm:$0xff] }
 0x341   : > { %v1358_v51 = vadd.f32 %v2427_v48, %v1357_v35  ;;  %v1583_v35 = vld [vmem:[#allocation13 + $0x50] sm:$0xff] }
 0x342   : > { %v1377_v52 = vmax.f32 %v1363_v50, 0.0 }
 0x343   : > { %v1376_v53 = vmax.f32 %v1358_v51, 0.0  ;;  %v2795_v54 = vpop.f32.mrb[2].mxu1  ;;  %v1584_v51 = vld [vmem:[#allocation13 + $0x58] sm:$0xff] }
 0x344   : > { %1381 = vst [vmem:[#allocation4 + $0x10] sm:$0xff] %v1377_v52  ;;  %v1373_v55 = vadd.f32 %v2795_v54, %v2427_v48  ;;  %v1367_v56 = vpop.f32.mrb[3].mxu1  ;;  %v1419_v6 = vmul.f32 %v2430_v61, %v1377_v52  ;;  %v1585_v52 = vld [vmem:[#allocation13 + $0x60] sm:$0xff] }
 0x345   : > { %1380 = vst [vmem:[#allocation4 + $0x8] sm:$0xff] %v1376_v53  ;;  %v1368_v57 = vadd.f32 %v2427_v48, %v1367_v56  ;;  %v1418_v9 = vmul.f32 %v2430_v61, %v1376_v53  ;;  %v1581_v48 = vld [vmem:[#allocation13 + $0x40] sm:$0xff]  ;;  %v1586_v53 = vld [vmem:[#allocation13 + $0x68] sm:$0xff]  ;;  %v1588_v56 = vld [vmem:[#allocation13 + $0x78] sm:$0xff] }
 0x346   : > { %v1379_v58 = vmax.f32 %v1373_v55, 0.0  ;;  %v3188_v50 = vpack.c.bf16 %v1582_v49, %v1581_v48  ;;  %v3196_v54 = vpack.c.bf16 %v1586_v53, %v1585_v52  ;;  %v1587_v55 = vld [vmem:[#allocation13 + $0x70] sm:$0xff] }
 0x347   : > { %v1378_v59 = vmax.f32 %v1368_v57, 0.0  ;;  %v3200_v57 = vpack.c.bf16 %v1588_v56, %v1587_v55  ;;  %v2434_v56 = vld [vmem:[%s4535_s29] ss:$0 sm:$0xff] }
 0x348   : > { %1383 = vst [vmem:[#allocation4 + $0x20] sm:$0xff] %v1379_v58  ;;  %v1421_v19 = vmul.f32 %v2430_v61, %v1379_v58  ;;  %v2432_v58 = vld [vmem:[%s4534_s8] ss:$0 sm:$0xff] }
 0x349   : > { %1382 = vst [vmem:[#allocation4 + $0x18] sm:$0xff] %v1378_v59  ;;  %v1420_v25 = vmul.f32 %v2430_v61, %v1378_v59 }
 0x34c   : > { %v1386_v63 = vld [vmem:[#allocation4 + $0x7] sm:$0xff]  ;;  %v1387_v1 = vld [vmem:[#allocation4 + $0xf] sm:$0xff] }
 0x34d   : > { %v1395_v2 = vmul.f32 %v2428_v60, %v1386_v63  ;;  %v1396_v3 = vmul.f32 %v2428_v60, %v1387_v1  ;;  %v1426_v4 = vld [vmem:[#allocation4 + $0x9] sm:$0xff] }
 0x34e   : > { %v1435_v11 = vmul.f32 %v2431_v5, %v1426_v4  ;;  %v1737_v4 = vld [vmem:[#allocation14] sm:$0xff] }
 0x34f   : > { %v1405_v7 = vadd.f32 %v2429_v62, %v1395_v2  ;;  %v1406_v8 = vadd.f32 %v2429_v62, %v1396_v3  ;;  %v1429_v10 = vld [vmem:[#allocation4 + $0x21] sm:$0xff] }
 0x350   : > { %1568 = vst [vmem:[#allocation4 + $0x28] sm:$0x3] %v3824_v0  ;;  %v1388_v12 = vld [vmem:[#allocation4 + $0x17] sm:$0xff]  ;;  %v1389_v13 = vld [vmem:[#allocation4 + $0x1f] sm:$0xff]  ;;  %v1438_v28 = vmul.f32 %v2431_v5, %v1429_v10 }
 0x351   : > { %v1427_v14 = vld [vmem:[#allocation4 + $0x11] sm:$0xff]  ;;  %v1422_v15 = vadd.f32 %v1418_v9, %v1405_v7  ;;  %v1423_v16 = vadd.f32 %v1419_v6, %v1406_v8  ;;  %v1397_v17 = vmul.f32 %v2428_v60, %v1388_v12  ;;  %v1398_v18 = vmul.f32 %v2428_v60, %v1389_v13  ;;  %v1428_v20 = vld [vmem:[#allocation4 + $0x19] sm:$0xff]  ;;  %v1740_v8 = vld [vmem:[#allocation14 + $0x18] sm:$0xff] }
 0x352   : > { %v1436_v21 = vmul.f32 %v2431_v5, %v1427_v14  ;;  %v1437_v33 = vmul.f32 %v2431_v5, %v1428_v20  ;;  %v1738_v5 = vld [vmem:[#allocation14 + $0x8] sm:$0xff]  ;;  %v1739_v7 = vld [vmem:[#allocation14 + $0x10] sm:$0xff]  ;;  %v1741_v10 = vld [vmem:[#allocation14 + $0x20] sm:$0xff] }
 0x353   : > { %v1439_v22 = vadd.f32 %v1435_v11, %v1422_v15  ;;  %v1407_v23 = vadd.f32 %v2429_v62, %v1397_v17  ;;  %v1408_v24 = vadd.f32 %v2429_v62, %v1398_v18  ;;  %v3204_v6 = vpack.c.bf16 %v1738_v5, %v1737_v4  ;;  %v1742_v11 = vld [vmem:[#allocation14 + $0x28] sm:$0xff]  ;;  %v1743_v13 = vld [vmem:[#allocation14 + $0x30] sm:$0xff]  ;;  %v1744_v14 = vld [vmem:[#allocation14 + $0x38] sm:$0xff] }
 0x354   : > { %v1440_v29 = vadd.f32 %v1436_v21, %v1423_v16  ;;  %v3208_v9 = vpack.c.bf16 %v1740_v8, %v1739_v7  ;;  %v3212_v12 = vpack.c.bf16 %v1742_v11, %v1741_v10  ;;  %v3216_v15 = vpack.c.bf16 %v1744_v14, %v1743_v13  ;;  %v1745_v16 = vld [vmem:[#allocation14 + $0x40] sm:$0xff]  ;;  %v1746_v17 = vld [vmem:[#allocation14 + $0x48] sm:$0xff]  ;;  %v1748_v20 = vld [vmem:[#allocation14 + $0x58] sm:$0xff] }
 0x355   : > { %v1443_v30 = vmax.f32 %v1439_v22, 0.0  ;;  %v1424_v31 = vadd.f32 %v1420_v25, %v1407_v23  ;;  %v1425_v32 = vadd.f32 %v1421_v19, %v1408_v24  ;;  %3205 = vmatprep.subr.bf16.mxu0 %v3204_v6  ;;  %v3220_v18 = vpack.c.bf16 %v1746_v17, %v1745_v16  ;;  %v1747_v19 = vld [vmem:[#allocation14 + $0x50] sm:$0xff]  ;;  %v1749_v22 = vld [vmem:[#allocation14 + $0x60] sm:$0xff]  ;;  %v1750_v23 = vld [vmem:[#allocation14 + $0x68] sm:$0xff] }
 0x356   : > { %v1444_v34 = vmax.f32 %v1440_v29, 0.0  ;;  %3207 = vmatpush3.bf16.msra.mxu0 %v3204_v6  ;;  %v3224_v21 = vpack.c.bf16 %v1748_v20, %v1747_v19  ;;  %v1751_v24 = vld [vmem:[#allocation14 + $0x70] sm:$0xff]  ;;  %v3228_v25 = vpack.c.bf16 %v1750_v23, %v1749_v22  ;;  %v1841_v29 = vld [vmem:[#allocation16 + $0x8] sm:$0xff]  ;;  %v1852_v20 = vld [vmem:[#allocation16 + $0x60] sm:$0xff] }
 0x357   : > { %v1441_v37 = vadd.f32 %v1437_v33, %v1424_v31  ;;  %v1442_v38 = vadd.f32 %v1438_v28, %v1425_v32  ;;  %2828 = vmatprep.mubr.f32.mxu1 %v1443_v30  ;;  %3209 = vmatprep.subr.bf16.mxu0 %v3208_v9  ;;  %v3232_v27 = vpack.c.bf16 %v1752_v26, %v1751_v24  ;;  %v1840_v28 = vld [vmem:[#allocation16] sm:$0xff]  ;;  %v1842_v30 = vld [vmem:[#allocation16 + $0x10] sm:$0xff]  ;;  %v1843_v32 = vld [vmem:[#allocation16 + $0x18] sm:$0xff] }
 0x358   : > { %2829 = vmatmul.mubr.f32.vlgmr.msra.gmra.mrb[4].mxu1 %v1444_v34  ;;  %v3236_v31 = vpack.c.bf16 %v1841_v29, %v1840_v28  ;;  %v3240_v33 = vpack.c.bf16 %v1843_v32, %v1842_v30  ;;  %v1844_v34 = vld [vmem:[#allocation16 + $0x20] sm:$0xff]  ;;  %v1850_v17 = vld [vmem:[#allocation16 + $0x50] sm:$0xff]  ;;  %v1855_v23 = vld [vmem:[#allocation16 + $0x78] sm:$0xff] }
 0x359   : > { %v1445_v41 = vmax.f32 %v1441_v37, 0.0  ;;  %v1446_v42 = vmax.f32 %v1442_v38, 0.0  ;;  %3175 = vmatpush3.bf16.msra.mxu1 %v4317_v47  ;;  %v3192_v47 = vpack.c.bf16 %v1584_v51, %v1583_v35  ;;  %v1846_v38 = vld [vmem:[#allocation16 + $0x30] sm:$0xff]  ;;  %v2012_v30 = vld [vmem:[#allocation17] sm:$0xff] }
 0x35a   : > { %3177 = vmatprep.subr.bf16.mxu1 %v3176_v36  ;;  %3211 = vmatpush3.bf16.msra.mxu0 %v3208_v9  ;;  %v3248_v40 = vpack.c.bf16 %v1847_v39, %v1846_v38  ;;  %v1854_v22 = vld [vmem:[#allocation16 + $0x70] sm:$0xff]  ;;  %v2017_v38 = vld [vmem:[#allocation17 + $0x28] sm:$0xff] }
 0x35b   : > { %2831 = vmatprep.mubr.f32.mxu1 %v1445_v41  ;;  %3213 = vmatprep.subr.bf16.mxu0 %v3212_v12  ;;  %v1848_v41 = vld [vmem:[#allocation16 + $0x40] sm:$0xff]  ;;  %v3264_v24 = vpack.c.bf16 %v1855_v23, %v1854_v22 }
 0x35c   : > { %2832 = vmatmul.mubr.f32.gmra.mrb[6].mxu1 %v1446_v42  ;;  %v1849_v42 = vld [vmem:[#allocation16 + $0x48] sm:$0xff] }
 0x35d   : > { %3179 = vmatpush3.bf16.msra.mxu1 %v3176_v36  ;;  %v1845_v36 = vld [vmem:[#allocation16 + $0x28] sm:$0xff] }
 0x35e   : > { %3181 = vmatprep.subr.bf16.mxu1 %v3180_v43  ;;  %3215 = vmatpush3.bf16.msra.mxu0 %v3212_v12  ;;  %v3244_v37 = vpack.c.bf16 %v1845_v36, %v1844_v34  ;;  %v2015_v34 = vld [vmem:[#allocation17 + $0x18] sm:$0xff] }
 0x35f   : > { %3217 = vmatprep.subr.bf16.mxu0 %v3216_v15 }
 0x361   : > { %3183 = vmatpush3.bf16.msra.mxu1 %v3180_v43  ;;  %v3252_v43 = vpack.c.bf16 %v1849_v42, %v1848_v41  ;;  %v2019_v41 = vld [vmem:[#allocation17 + $0x38] sm:$0xff] }
 0x362   : > { %3185 = vmatprep.subr.bf16.mxu1 %v3184_v46  ;;  %3219 = vmatpush3.bf16.msra.mxu0 %v3216_v15 }
 0x363   : > { %3221 = vmatprep.subr.bf16.mxu0 %v3220_v18 }
 0x365   : > { %3187 = vmatpush3.bf16.msra.mxu1 %v3184_v46 }
 0x366   : > { %3189 = vmatprep.subr.bf16.mxu1 %v3188_v50  ;;  %3223 = vmatpush3.bf16.msra.mxu0 %v3220_v18  ;;  %v1851_v18 = vld [vmem:[#allocation16 + $0x58] sm:$0xff] }
 0x367   : > { %3225 = vmatprep.subr.bf16.mxu0 %v3224_v21  ;;  %v3256_v19 = vpack.c.bf16 %v1851_v18, %v1850_v17  ;;  %v2442_v17 = vld [vmem:[%s4540_s28 + $0x1] ss:$0 sm:$0xff] }
 0x368   : > { %v3474_v18 = vld [vmem:[#allocation3 + $0x30] sm:$0xff] }
 0x369   : > { %3191 = vmatpush3.bf16.msra.mxu1 %v3188_v50 }
 0x36a   : > { %3193 = vmatprep.subr.bf16.mxu1 %v3192_v47  ;;  %3227 = vmatpush3.bf16.msra.mxu0 %v3224_v21 }
 0x36b   : > { %3229 = vmatprep.subr.bf16.mxu0 %v3228_v25 }
 0x36d   : > { %3195 = vmatpush3.bf16.msra.mxu1 %v3192_v47 }
 0x36e   : > { %3197 = vmatprep.subr.bf16.mxu1 %v3196_v54  ;;  %3231 = vmatpush3.bf16.msra.mxu0 %v3228_v25  ;;  %v2438_v25 = vld [vmem:[%s4537_s1] ss:$0 sm:$0xff] }
 0x36f   : > { %3233 = vmatprep.subr.bf16.mxu0 %v3232_v27 }
 0x371   : > { %3199 = vmatpush3.bf16.msra.mxu1 %v3196_v54 }
 0x372   : > { %3201 = vmatprep.subr.bf16.mxu1 %v3200_v57  ;;  %3235 = vmatpush3.bf16.msra.mxu0 %v3232_v27 }
 0x375   : > { %3203 = vmatpush3.bf16.msra.mxu1 %v3200_v57  ;;  %v2436_v57 = vld [vmem:[%s4535_s29 + $0x1] ss:$0 sm:$0xff] }
 0x376   : > { %3237 = vmatprep.subr.bf16.mxu1 %v3236_v31 }
 0x42b   : > { %v2830_v59 = vpop.f32.mrb[4].mxu1 }
 0x42c   : > { %v1545_v60 = vpop.f32.mrb[5].mxu1  ;;  %v1551_v62 = vadd.f32 %v2830_v59, %v2432_v58 }
 0x42d   : > { %v1546_v61 = vadd.f32 %v2432_v58, %v1545_v60 }
 0x42f   : > { %v2833_v63 = vpop.f32.mrb[6].mxu1  ;;  %2866 = vmatprep.mubr.f32.mxu1 %v1546_v61 }
 0x430   : > { %v1561_v1 = vadd.f32 %v2833_v63, %v2432_v58  ;;  %v1555_v2 = vpop.f32.mrb[7].mxu1  ;;  %2867 = vmatmul.mubr.f32.vlgmr.msra.gmra.mrb[8].mxu1 %v1551_v62  ;;  %v2437_v63 = vld [vmem:[%s4535_s29 + $0x2] ss:$0 sm:$0xff] }
 0x431   : > { %v1556_v3 = vadd.f32 %v2432_v58, %v1555_v2  ;;  %3239 = vmatpush3.bf16.msra.mxu1 %v3236_v31  ;;  %v2435_v58 = vld [vmem:[%s4536_s23] ss:$0 sm:$0xff]  ;;  %v2013_v31 = vld [vmem:[#allocation17 + $0x8] sm:$0xff]  ;;  %s2448_s23 = sshll.u32 %s3967_s26, 4  ;;  %s3825_s26 = smov [#allocation20]  }
 0x432   : > { %1567 = vst [vmem:[#allocation4 + $0x20] sm:$0xff] %v1561_v1  ;;  %3241 = vmatprep.subr.bf16.mxu1 %v3240_v33  ;;  %v3268_v32 = vpack.c.bf16 %v2013_v31, %v2012_v30  ;;  %v2444_v31 = vld [vmem:[%s4540_s28 + $0x3] ss:$0 sm:$0xff]  ;;  %s3733_s3 = sshll.u32 %s3825_s26, 4  ;;  %s3734_s3 = int_to_ptr.vmem [resolvable:$false] %s3733_s3 }
 0x433   : > { %1566 = vst [vmem:[#allocation4 + $0x18] sm:$0xff] %v1556_v3  ;;  %2869 = vmatprep.mubr.f32.mxu1 %v1556_v3  ;;  %s3735_s8 = scalar_lea.vmem %s3734_s3, 32 }
 0x434   : > { %2009 = vst [vmem:[#allocation4 + $0x18] sm:$0x3] %v3824_v0  ;;  %2870 = vmatmul.mubr.f32.gmra.mrb[10].mxu1 %v1561_v1  ;;  %3269 = vmatprep.subr.bf16.mxu0 %v3268_v32 }
 0x435   : > { %2229 = vst [vmem:[#allocation4 + $0x18] sm:$0x3] %v3824_v0  ;;  %3243 = vmatpush3.bf16.msra.mxu1 %v3240_v33  ;;  %v2014_v33 = vld [vmem:[#allocation17 + $0x10] sm:$0xff] }
 0x436   : > { %3245 = vmatprep.subr.bf16.mxu1 %v3244_v37  ;;  %v3272_v36 = vpack.c.bf16 %v2015_v34, %v2014_v33 }
 0x439   : > { %3247 = vmatpush3.bf16.msra.mxu1 %v3244_v37  ;;  %v2016_v37 = vld [vmem:[#allocation17 + $0x20] sm:$0xff] }
 0x43a   : > { %3249 = vmatprep.subr.bf16.mxu1 %v3248_v40  ;;  %v3276_v39 = vpack.c.bf16 %v2017_v38, %v2016_v37  ;;  %v2445_v38 = vld [vmem:[%s4540_s28 + $0x4] ss:$0 sm:$0xff] }
 0x43d   : > { %3251 = vmatpush3.bf16.msra.mxu1 %v3248_v40  ;;  %v2018_v40 = vld [vmem:[#allocation17 + $0x30] sm:$0xff] }
 0x43e   : > { %3253 = vmatprep.subr.bf16.mxu1 %v3252_v43  ;;  %v3280_v42 = vpack.c.bf16 %v2019_v41, %v2018_v40 }
 0x441   : > { %3255 = vmatpush3.bf16.msra.mxu1 %v3252_v43  ;;  %v2020_v43 = vld [vmem:[#allocation17 + $0x40] sm:$0xff] }
 0x442   : > { %3257 = vmatprep.subr.bf16.mxu1 %v3256_v19 }
 0x445   : > { %3259 = vmatpush3.bf16.msra.mxu1 %v3256_v19 }
 0x503   : > { %v2868_v45 = vpop.f32.mrb[8].mxu1 }
 0x504   : > { %v1668_v46 = vadd.f32 %v2868_v45, %v2433_v44  ;;  %v1662_v48 = vpop.f32.mrb[9].mxu1 }
 0x505   : > { %v1663_v49 = vadd.f32 %v2433_v44, %v1662_v48  ;;  %v2023_v48 = vld [vmem:[#allocation17 + $0x58] sm:$0xff] }
 0x506   : > { %v1682_v50 = vmax.f32 %v1668_v46, 0.0  ;;  %v2022_v46 = vld [vmem:[#allocation17 + $0x50] sm:$0xff] }
 0x507   : > { %v1681_v35 = vmax.f32 %v1663_v49, 0.0  ;;  %v2871_v51 = vpop.f32.mrb[10].mxu1  ;;  %v3288_v49 = vpack.c.bf16 %v2023_v48, %v2022_v46 }
 0x508   : > { %1686 = vst [vmem:[#allocation2 + $0x10] sm:$0xff] %v1682_v50  ;;  %v1678_v47 = vadd.f32 %v2871_v51, %v2433_v44  ;;  %v1672_v52 = vpop.f32.mrb[11].mxu1  ;;  %v2024_v50 = vld [vmem:[#allocation17 + $0x60] sm:$0xff] }
 0x509   : > { %1685 = vst [vmem:[#allocation2 + $0x8] sm:$0xff] %v1681_v35  ;;  %v1673_v53 = vadd.f32 %v2433_v44, %v1672_v52  ;;  %v2021_v44 = vld [vmem:[#allocation17 + $0x48] sm:$0xff]  ;;  %v2027_v52 = vld [vmem:[#allocation17 + $0x78] sm:$0xff] }
 0x50a   : > { %v1684_v54 = vmax.f32 %v1678_v47, 0.0  ;;  %v3284_v45 = vpack.c.bf16 %v2021_v44, %v2020_v43  ;;  %v2025_v35 = vld [vmem:[#allocation17 + $0x68] sm:$0xff]  ;;  %v2026_v47 = vld [vmem:[#allocation17 + $0x70] sm:$0xff] }
 0x50b   : > { %v1683_v55 = vmax.f32 %v1673_v53, 0.0  ;;  %v3292_v51 = vpack.c.bf16 %v2025_v35, %v2024_v50  ;;  %v3296_v53 = vpack.c.bf16 %v2027_v52, %v2026_v47  ;;  %v2129_v47 = vld [vmem:[#allocation19 + $0x50] sm:$0xff]  ;;  %v2130_v52 = vld [vmem:[#allocation19 + $0x58] sm:$0xff] }
 0x50c   : > { %1688 = vst [vmem:[#allocation2 + $0x20] sm:$0xff] %v1684_v54  ;;  %v2119_v54 = vld [vmem:[#allocation19] sm:$0xff] }
 0x50d   : > { %1687 = vst [vmem:[#allocation2 + $0x18] sm:$0xff] %v1683_v55  ;;  %v2120_v55 = vld [vmem:[#allocation19 + $0x8] sm:$0xff] }
 0x510   : > { %v1691_v59 = vld [vmem:[#allocation2 + $0x7] ss:$2 sm:$0xff]  ;;  %v1708_v60 = vld [vmem:[#allocation2 + $0x8] ss:$2 sm:$0xff] }
 0x511   : > { %v1698_v61 = vmul.f32 %v2434_v56, %v1691_v59  ;;  %v1719_v62 = vld [vmem:[#allocation2 + $0x9] ss:$2 sm:$0xff]  ;;  %v1715_v2 = vmul.f32 %v2436_v57, %v1708_v60 }
 0x512   : > { %v1726_v8 = vmul.f32 %v2437_v63, %v1719_v62  ;;  %v2123_v60 = vld [vmem:[#allocation19 + $0x20] sm:$0xff] }
 0x513   : > { %v1706_v1 = vadd.f32 %v2435_v58, %v1698_v61  ;;  %v2124_v61 = vld [vmem:[#allocation19 + $0x28] sm:$0xff] }
 0x514   : > { %v1692_v3 = vld [vmem:[#allocation2 + $0x17] ss:$2 sm:$0xff]  ;;  %v1709_v4 = vld [vmem:[#allocation2 + $0x18] ss:$2 sm:$0xff]  ;;  %v3308_v62 = vpack.c.bf16 %v2124_v61, %v2123_v60 }
 0x515   : > { %v1720_v5 = vld [vmem:[#allocation2 + $0x19] ss:$2 sm:$0xff]  ;;  %v1699_v6 = vmul.f32 %v2434_v56, %v1692_v3  ;;  %v1717_v7 = vadd.f32 %v1715_v2, %v1706_v1  ;;  %v1716_v10 = vmul.f32 %v2436_v57, %v1709_v4  ;;  %v3300_v57 = vpack.c.bf16 %v2120_v55, %v2119_v54  ;;  %v2126_v1 = vld [vmem:[#allocation19 + $0x38] sm:$0xff]  ;;  %v2127_v3 = vld [vmem:[#allocation19 + $0x40] sm:$0xff] }
 0x516   : > { %1837 = vst [vmem:[#allocation2 + $0x18] sm:$0x3] %v3824_v0  ;;  %v1727_v12 = vmul.f32 %v2437_v63, %v1720_v5  ;;  %v1853_v0 = vld [vmem:[#allocation16 + $0x68] sm:$0xff]  ;;  %v2121_v56 = vld [vmem:[#allocation19 + $0x10] sm:$0xff]  ;;  %v2131_v54 = vld [vmem:[#allocation19 + $0x60] sm:$0xff] }
 0x517   : > { %v1707_v9 = vadd.f32 %v2435_v58, %v1699_v6  ;;  %v1728_v11 = vadd.f32 %v1726_v8, %v1717_v7  ;;  %v3260_v21 = vpack.c.bf16 %v1853_v0, %v1852_v20  ;;  %v2122_v58 = vld [vmem:[#allocation19 + $0x18] sm:$0xff]  ;;  %v2125_v63 = vld [vmem:[#allocation19 + $0x30] sm:$0xff]  ;;  %v2128_v4 = vld [vmem:[#allocation19 + $0x48] sm:$0xff] }
 0x518   : > { %v3304_v59 = vpack.c.bf16 %v2122_v58, %v2121_v56  ;;  %v3312_v2 = vpack.c.bf16 %v2126_v1, %v2125_v63  ;;  %v3316_v5 = vpack.c.bf16 %v2128_v4, %v2127_v3  ;;  %v2439_v6 = vld [vmem:[%s4538_s17] ss:$0 sm:$0xff]  ;;  %v2132_v55 = vld [vmem:[#allocation19 + $0x68] sm:$0xff]  ;;  %v2134_v58 = vld [vmem:[#allocation19 + $0x78] sm:$0xff]  ;;  %s2248_s17 = scalar_lea.sflag [#allocation7], %s4264_s7 }
 0x519   : > { %v1730_v13 = vmax.f32 %v1728_v11, 0.0  ;;  %v1718_v14 = vadd.f32 %v1716_v10, %v1707_v9  ;;  %3261 = vmatprep.subr.bf16.mxu1 %v3260_v21  ;;  %v3324_v56 = vpack.c.bf16 %v2132_v55, %v2131_v54  ;;  %v2446_v60 = vld [vmem:[%s4541_s2] ss:$0 sm:$0xff]  ;;  %s4543_s2 = sld [smem:[#allocation45_spill]] }
 0x51a   : > { %3263 = vmatpush3.bf16.msra.mxu1 %v3260_v21  ;;  %v2447_v4 = vld [vmem:[%s4542_s5] ss:$0 sm:$0xff] }
 0x51b   : > { %2904 = vmatprep.mubr.f32.mxu0 %v1730_v13  ;;  %v1729_v15 = vadd.f32 %v1727_v12, %v1718_v14  ;;  %3265 = vmatprep.subr.bf16.mxu1 %v3264_v24  ;;  %v2441_v13 = vld [vmem:[%s4539_s13] ss:$0 sm:$0xff]  ;;  %s843_s13 = scalar_lea.vmem [#allocation20], %s4264_s7 }
 0x51c   : > { %v2440_v14 = vld [vmem:[%s4540_s28] ss:$0 sm:$0xff]  ;;  %s2260_s14 = sshll.u32 %s843_s13, 4  ;;  %s4405_s14 = int_to_ptr.vmem [resolvable:$true] %s2260_s14 }
 0x51d   : > { %v1731_v16 = vmax.f32 %v1729_v15, 0.0  ;;  %s3729_s5 = scalar_lea.vmem %s4405_s14, 16  ;;  %p3736_p2 = scmp.lt.s32.totalorder %s4405_s14, %s3734_s3 }
 0x51e   : > { %3267 = vmatpush3.bf16.msra.mxu1 %v3264_v24  ;;  %v2443_v24 = vld [vmem:[%s4540_s28 + $0x2] ss:$0 sm:$0xff]  ;;  %p3730_p12 = scmp.ne.s32.totalorder %s4405_s14, %s3729_s5  ;;  %p3737_p8 = scmp.lt.s32.totalorder %s3735_s8, %s3729_s5 }
 0x51f   : > { %2905 = vmatmul.mubr.f32.vlgmr.msra.gmra.mrb[4].mxu0 %v1731_v16  ;;  %3301 = vmatprep.subr.bf16.mxu1 %v3300_v57  ;;  %s4403_s22 = scalar_lea.hbm %s4543_s2, %s2448_s23 }
 0x520   : > { %3271 = vmatpush3.bf16.msra.mxu0 %v3268_v32  ;;  %p3731_p13 = pnand %p3730_p12, %p4544_p1  ;;  %p3738_p4 = por %p3737_p8, %p3736_p2 }
 0x521   : > { %3273 = vmatprep.subr.bf16.mxu0 %v3272_v36 }
 0x522   : > { %p3732_p0 = pneg %p3731_p13 }
 0x524   : > { %3275 = vmatpush3.bf16.msra.mxu0 %v3272_v36  ;;  %p3739_p10 = pnand %p3738_p4, %p3732_p0 }
 0x525   : > { %3277 = vmatprep.subr.bf16.mxu0 %v3276_v39 }
 0x528   : > { %3279 = vmatpush3.bf16.msra.mxu0 %v3276_v39 }
 0x529   : > { %3281 = vmatprep.subr.bf16.mxu0 %v3280_v42 }
 0x52c   : > { %3283 = vmatpush3.bf16.msra.mxu0 %v3280_v42 }
 0x52d   : > { %3285 = vmatprep.subr.bf16.mxu0 %v3284_v45 }
 0x530   : > { %3287 = vmatpush3.bf16.msra.mxu0 %v3284_v45 }
 0x531   : > { %3289 = vmatprep.subr.bf16.mxu0 %v3288_v49 }
 0x534   : > { %3291 = vmatpush3.bf16.msra.mxu0 %v3288_v49 }
 0x535   : > { %3293 = vmatprep.subr.bf16.mxu0 %v3292_v51 }
 0x538   : > { %3295 = vmatpush3.bf16.msra.mxu0 %v3292_v51 }
 0x539   : > { %3297 = vmatprep.subr.bf16.mxu0 %v3296_v53 }
 0x53c   : > { %3299 = vmatpush3.bf16.msra.mxu0 %v3296_v53  ;;  %v3320_v53 = vpack.c.bf16 %v2130_v52, %v2129_v47 }
 0x5f2   : > { %v2906_v26 = vpop.f32.mrb[4].mxu0 }
 0x5f3   : > { %v4361_v27 = vadd.f32 %v2906_v26, %v2438_v25  ;;  %v1826_v28 = vpop.f32.mrb[5].mxu0 }
 0x5f4   : > { %v4363_v29 = vadd.f32 %v2438_v25, %v1826_v28 }
 0x5f5   : > { %1836 = vst [vmem:[#allocation2 + $0x10] sm:$0xff] %v4361_v27 }
 0x5f6   : > { %1835 = vst [vmem:[#allocation2 + $0x8] sm:$0xff] %v4363_v29  ;;  %2939 = vmatprep.mubr.f32.mxu1 %v4363_v29 }
 0x5f7   : > { %2940 = vmatmul.mubr.f32.vlgmr.msra.gmra.mrb[12].mxu1 %v4361_v27 }
 0x5f8   : > { %3303 = vmatpush3.bf16.msra.mxu1 %v3300_v57  ;;  %v2133_v57 = vld [vmem:[#allocation19 + $0x70] sm:$0xff] }
 0x5f9   : > { %3305 = vmatprep.subr.bf16.mxu1 %v3304_v59 }
 0x5fc   : > { %3307 = vmatpush3.bf16.msra.mxu1 %v3304_v59  ;;  %v3328_v59 = vpack.c.bf16 %v2134_v58, %v2133_v57 }
 0x5fd   : > { %3309 = vmatprep.subr.bf16.mxu1 %v3308_v62 }
 0x600   : > { %3311 = vmatpush3.bf16.msra.mxu1 %v3308_v62 }
 0x601   : > { %3313 = vmatprep.subr.bf16.mxu1 %v3312_v2 }
 0x604   : > { %3315 = vmatpush3.bf16.msra.mxu1 %v3312_v2 }
 0x605   : > { %3317 = vmatprep.subr.bf16.mxu1 %v3316_v5 }
 0x608   : > { %3319 = vmatpush3.bf16.msra.mxu1 %v3316_v5 }
 0x609   : > { %3321 = vmatprep.subr.bf16.mxu1 %v3320_v53 }
 0x60c   : > { %3323 = vmatpush3.bf16.msra.mxu1 %v3320_v53 }
 0x60d   : > { %3325 = vmatprep.subr.bf16.mxu1 %v3324_v56 }
 0x610   : > { %3327 = vmatpush3.bf16.msra.mxu1 %v3324_v56 }
 0x611   : > { %3329 = vmatprep.subr.bf16.mxu1 %v3328_v59 }
 0x614   : > { %3331 = vmatpush3.bf16.msra.mxu1 %v3328_v59 }
 0x6ca   : > { %v2941_v7 = vpop.f32.mrb[12].mxu1 }
 0x6cb   : > { %v1935_v8 = vadd.f32 %v2941_v7, %v2439_v6  ;;  %v1929_v9 = vpop.f32.mrb[13].mxu1 }
 0x6cc   : > { %v1930_v10 = vadd.f32 %v2439_v6, %v1929_v9 }
 0x6cd   : > { %v1939_v11 = vmax.f32 %v1935_v8, 0.0 }
 0x6ce   : > { %v1938_v12 = vmax.f32 %v1930_v10, 0.0 }
 0x6cf   : > { %1941 = vst [vmem:[#allocation3 + $0x10] sm:$0xff] %v1939_v11  ;;  %v1980_v33 = vmul.f32 %v2443_v24, %v1939_v11 }
 0x6d0   : > { %1940 = vst [vmem:[#allocation3 + $0x8] sm:$0xff] %v1938_v12  ;;  %v1979_v37 = vmul.f32 %v2443_v24, %v1938_v12 }
 0x6d6   : > { %v1984_v15 = vld [vmem:[#allocation3 + $0x11] sm:$0xff] }
 0x6d7   : > { %v1995_v16 = vld [vmem:[#allocation3 + $0x12] sm:$0xff]  ;;  %v1944_v19 = vld [vmem:[#allocation3 + $0x6] sm:$0xff]  ;;  %v1991_v40 = vmul.f32 %v2444_v31, %v1984_v15 }
 0x6d8   : > { %2116 = vst [vmem:[#allocation3 + $0x18] sm:$0x3] %v3474_v18  ;;  %v1945_v20 = vld [vmem:[#allocation3 + $0xe] sm:$0xff]  ;;  %v1951_v21 = vmul.f32 %v2440_v14, %v1944_v19  ;;  %v2002_v44 = vmul.f32 %v2445_v38, %v1995_v16 }
 0x6d9   : > { %v1961_v0 = vld [vmem:[#allocation3 + $0x7] sm:$0xff]  ;;  %v1952_v22 = vmul.f32 %v2440_v14, %v1945_v20  ;;  %v1962_v23 = vld [vmem:[#allocation3 + $0xf] sm:$0xff] }
 0x6da   : > { %v1959_v25 = vadd.f32 %v2441_v13, %v1951_v21  ;;  %v1968_v28 = vmul.f32 %v2442_v17, %v1961_v0  ;;  %v1969_v30 = vmul.f32 %v2442_v17, %v1962_v23  ;;  %v1983_v32 = vld [vmem:[#allocation3 + $0x9] sm:$0xff] }
 0x6db   : > { %v1960_v26 = vadd.f32 %v2441_v13, %v1952_v22  ;;  %v1994_v39 = vld [vmem:[#allocation3 + $0xa] sm:$0xff]  ;;  %v1990_v43 = vmul.f32 %v2444_v31, %v1983_v32 }
 0x6dc   : > { %v1970_v34 = vadd.f32 %v1968_v28, %v1959_v25  ;;  %v2001_v48 = vmul.f32 %v2445_v38, %v1994_v39 }
 0x6dd   : > { %v1971_v36 = vadd.f32 %v1969_v30, %v1960_v26 }
 0x6de   : > { %v1981_v41 = vadd.f32 %v1979_v37, %v1970_v34 }
 0x6df   : > { %v1982_v42 = vadd.f32 %v1980_v33, %v1971_v36 }
 0x6e0   : > { %v1992_v45 = vadd.f32 %v1990_v43, %v1981_v41 }
 0x6e1   : > { %v1993_v46 = vadd.f32 %v1991_v40, %v1982_v42 }
 0x6e2   : > { %v2003_v49 = vadd.f32 %v2001_v48, %v1992_v45 }
 0x6e3   : > { %v2004_v50 = vadd.f32 %v2002_v44, %v1993_v46 }
 0x6e4   : > { %v2005_v35 = vmax.f32 %v2003_v49, 0.0 }
 0x6e5   : > { %v2006_v51 = vmax.f32 %v2004_v50, 0.0 }
 0x6e6   : > { %2974 = vmatprep.mubr.f32.mxu0 %v2005_v35 }
 0x6e7   : > { %2975 = vmatmul.mubr.f32.vlgmr.msra.gmra.mrb[6].mxu0 %v2006_v51 }
 0x7ba   : > { %v2976_v61 = vpop.f32.mrb[6].mxu0 }
 0x7bb   : > { %v2107_v62 = vadd.f32 %v2976_v61, %v2446_v60  ;;  %v2101_v63 = vpop.f32.mrb[7].mxu0 }
 0x7bc   : > { %v2102_v1 = vadd.f32 %v2446_v60, %v2101_v63 }
 0x7bd   : > { %v2113_v2 = vadd.f32 %v2107_v62, %v4361_v27 }
 0x7be   : > { %v2112_v3 = vadd.f32 %v2102_v1, %v4363_v29 }
 0x7bf   : > { %2115 = vst [vmem:[#allocation3 + $0x10] sm:$0xff] %v2113_v2 }
 0x7c0   : > { %2114 = vst [vmem:[#allocation3 + $0x8] sm:$0xff] %v2112_v3  ;;  %3009 = vmatprep.mubr.f32.mxu1 %v2112_v3 }
 0x7c1   : > { %3010 = vmatmul.mubr.f32.vlgmr.msra.gmra.mrb[14].mxu1 %v2113_v2 }
 0x894   : > { %v3011_v5 = vpop.f32.mrb[14].mxu1 }
 0x895   : > { %v2214_v6 = vadd.f32 %v3011_v5, %v2447_v4  ;;  %v2208_v7 = vpop.f32.mrb[15].mxu1 }
 0x896   : > { %v2209_v8 = vadd.f32 %v2447_v4, %v2208_v7 }
 0x897   : > { %v2218_v9 = vadd.f32 3.0, %v2214_v6 }
 0x898   : > { %v2217_v10 = vadd.f32 3.0, %v2209_v8 }
 0x899   : > { %v2220_v11 = vmax.f32 %v2218_v9, 0.0 }
 0x89a   : > { %v2219_v12 = vmax.f32 %v2217_v10, 0.0 }
 0x89b   : > { %v2222_v13 = vmin.f32 %v2220_v11, 6.0 }
 0x89c   : > { %v2221_v27 = vmin.f32 %v2219_v12, 6.0 }
 0x89d   : > { %v2224_v14 = vmul.f32 %v2222_v13, %v2214_v6 }
 0x89e   : > { %v2223_v29 = vmul.f32 %v2221_v27, %v2209_v8 }
 0x89f   : > { %v2226_v15 = vmul.f32 0.16666667, %v2224_v14 }
 0x8a0   : > { %v2225_v16 = vmul.f32 0.16666667, %v2223_v29 }
 0x8a1   : > { %2228 = vst [vmem:[#allocation4 + $0x10] sm:$0xff] %v2226_v15 }
 0x8a2   : > { %2227 = vst [vmem:[#allocation4 + $0x8] sm:$0xff] %v2225_v16  ;;  %v2232_v17 = vadd.f32 %v2226_v15, %v2225_v16 }
 0x8a4   : > { %v2233_v18 = vrot.slane %v2232_v17, 4 }
 0x8a6   : > { %v2234_v19 = vadd.f32 %v2233_v18, %v2232_v17 }
 0x8a8   : > { %v2235_v20 = vrot.slane %v2234_v19, 2 }
 0x8aa   : > { %v2236_v0 = vadd.f32 %v2235_v20, %v2234_v19 }
 0x8ac   : > { %v2237_v21 = vrot.slane %v2236_v0, 1 }
 0x8ae   : > { %v2238_v22 = vadd.f32 %v2237_v21, %v2236_v0 }
 0x8b0   : > { %v2240_v23 = vmul.f32 0.0625, %v2238_v22 }
 0x8b2   : > { %v2241_v24 = vadd.f32 3.0, %v2240_v23 }
 0x8b4   : > { %v2242_v25 = vmax.f32 %v2241_v24, 0.0 }
 0x8b6   : > { %v2243_v26 = vmin.f32 %v2242_v25, 6.0 }
 0x8b8   : > { %v2244_v28 = vmul.f32 %v2243_v26, %v2240_v23 }
 0x8ba   : > { %v2245_v30 = vmul.f32 0.16666667, %v2244_v28 }
 0x8bc   : > { %2246 = vst [vmem:[%s843_s13] sm:$0x1] %v2245_v30 }
 0x8bd   : > { %3742 = shalt.err (!%p3739_p10)
}
 0x8be   : > { %s3743_s7 = scalar_lea.hbm %s4403_s22, 16  ;;  %s3747_s0 = scalar_lea.hbm %s4543_s2, 32 }
 0x8bf   : > { %p3744_p11 = scmp.ne.s32.totalorder %s4403_s22, %s3743_s7  ;;  %p3748_p7 = scmp.lt.u32.totalorder %s4403_s22, %s4543_s2 }
 0x8c0   : > { %p3749_p6 = scmp.lt.u32.totalorder %s3747_s0, %s3743_s7  ;;  %p3751_p12 = scmp.lt.u32.totalorder %s3743_s7, %s4403_s22 }
 0x8c1   : > { %p3745_p3 = pnand %p3744_p11, %p4544_p1 }
 0x8c2   : > { %p3750_p9 = por %p3749_p6, %p3748_p7 }
 0x8c3   : > { %p3746_p5 = pneg %p3745_p3 }
 0x8c4   : > { %p3752_p13 = por %p3751_p12, %p3750_p9 }
 0x8c6   : > { %p3753_p0 = pnand %p3752_p13, %p3746_p5 }
 0x8c8   : > { %3756 = shalt.err (!%p3753_p0)
}
 0x8c9   : > { %3378 = dma.vmem_to_hbm [thread:$0]  (%p4544_p1), %s4405_s14, 16, %s4403_s22, %s2248_s17  }
 0x8ca PF: > { %s2272_s8 = sand.u32 1, %s3799_s4   ;;  %p4545_p2 = scmp.ne.s32.totalorder %s4516_s27, 0 }
 0x8cb   : > { %p4546_p8 = scmp.ge.s32.totalorder %s3811_s25, 2  ;;  %s2273_s5 = scalar_lea.sflag [#allocation7], %s2272_s8 }
 0x8cd   : > { %p3410_p4 = pnand %p4546_p8, %p4545_p2 }
 0x8cf   : > { %3794 = dma.done.wait (!%p3410_p4), %s2273_s5, 16  }
 0x8d0   : > { %3796 = vsyncadd (!%p3410_p4), %s2273_s5, 4294967280  ;;  %p40_p10 = scmp.ge.s32.totalorder %s4182_s6, 4   ;;  %s4547_s4 = smov %s3803_s30 }
 0x8d1   : > { %s4548_s30 = smov %s3807_s24  ;;  %s4549_s24 = smov %s4193_s11 }
 0x8d2   : > { %s4550_s25 = smov %s4182_s6  ;;  %42 = sbr.rel (!%p40_p10) target bundleno = 29 (0x1d), region = 203 }
 0x8d9   :  { %2277 = vsyncpa [#allocation6], 1 }
 0x8da   :  { %2279 = vsyncpa [#allocation6 + $0x1], 1 }
 0x8db   :  { %2280 = vsyncpa [#allocation9], 1 }
 0x8dc   :  { %2281 = vsyncpa [#allocation12], 1 }
 0x8dd   :  { %2282 = vsyncpa [#allocation15], 1 }
 0x8de   :  { %2283 = vsyncpa [#allocation18], 1 }
 0x8df   :  { %2284 = vsyncpa [#allocation7], 1 }
 0x8e0   :  { %2286 = vsyncpa [#allocation7 + $0x1], 1 }

</bundles_post_ra>
